<compile_context>
chip_gen: v7x
topology: tpu7x:2x2x1
jax: 0.10.0
libtpu: 0.0.40
codegen_flags: <defaults>
</compile_context>

<pallas_src>
import functools

import jax
import jax.numpy as jnp
import numpy as np
from jax.experimental import pallas as pl
from jax.experimental.pallas import tpu as pltpu

_MIB = 1024 * 1024


# ----------------------------------------------------------------------------
# Fused kernel
# ----------------------------------------------------------------------------
def _basic_block_kernel(x_ref, w1_ref, b1_ref, w2_ref, b2_ref, out_ref,
                        win_ref, h_ref, *, end_relu, images, img_h,
                        compute_dtype):
    """Fused BasicBlock on `images` whole images.

    x_ref   : (images, H, W*Cin)      input tile (lane-dense)
    w1_ref  : (3, W*Cin,  W*Cout)     block-circulant conv1 weights, BN1 scale
                                      folded in, compute_dtype
    b1_ref  : (1, W*Cout)             BN1 shift tiled over W, f32
    w2_ref  : (3, W*Cout, W*Cout)     block-circulant conv2 weights (BN2 folded)
    b2_ref  : (1, W*Cout)             BN2 shift tiled over W, f32
    out_ref : (images, H, W*Cout)
    win_ref : VMEM (images*(H+4), W*Cin)     circular-H windows, concatenated
    h_ref   : VMEM (images*(H+4)-2, W*Cout)  f32 conv1+bn1+relu output windows
    """
    H = img_h
    P = H + 4                      # window rows per image: x rows [-2, H+2)
    M = images * P

    # ---- assemble per-image circular-H windows (rows already resident) -----
    for i in range(images):                          # static unroll, small
        base = i * P
        win_ref[base:base + 2, :] = x_ref[i, H - 2:H, :]
        win_ref[base + 2:base + 2 + H, :] = x_ref[i]
        win_ref[base + 2 + H:base + 4 + H, :] = x_ref[i, 0:2, :]

    def tap_dots(src_ref, rows, w_ref):
        # 3 deep-K MXU dots (one per kh tap); circular-W wrap is encoded in the
        # block-circulant weights.  LHS cast to compute_dtype, f32 accumulate.
        acc = jnp.dot(src_ref[0:rows, :].astype(compute_dtype), w_ref[0],
                      preferred_element_type=jnp.float32)
        acc = acc + jnp.dot(src_ref[1:1 + rows, :].astype(compute_dtype),
                            w_ref[1], preferred_element_type=jnp.float32)
        acc = acc + jnp.dot(src_ref[2:2 + rows, :].astype(compute_dtype),
                            w_ref[2], preferred_element_type=jnp.float32)
        return acc

    # ---- conv1 (+folded BN1 scale) + shift + relu over all window rows -----
    # Rows straddling an image seam produce junk that is simply never consumed.
    n1 = M - 2
    acc1 = tap_dots(win_ref, n1, w1_ref)
    h_ref[...] = jnp.maximum(acc1 + b1_ref[...], 0.0)

    # ---- conv2 (+folded BN2 scale) + shift + residual (+ final relu) -------
    n2 = M - 4
    acc2 = tap_dots(h_ref, n2, w2_ref) + b2_ref[...]

    for i in range(images):
        y = acc2[i * P:i * P + H, :] + x_ref[i].astype(jnp.float32)
        if end_relu:
            y = jnp.maximum(y, 0.0)
        out_ref[i] = y.astype(out_ref.dtype)


# ----------------------------------------------------------------------------
# Host-side parameter preparation (BN fold + block-circulant build)
# ----------------------------------------------------------------------------
def _prepare_block_params(params, width, compute_dtype):
    """Fold BN scale into conv weights; build block-circulant W-matrices."""

    def circulant(w_hwio, scale):
        w = (np.asarray(w_hwio, np.float32)
             * np.asarray(scale, np.float32)[None, None, None, :])
        kh_n, kw_n, cin, cout = w.shape
        big = np.zeros((kh_n, width * cin, width * cout), np.float32)
        for kh in range(kh_n):
            for wp in range(width):                # output column
                for kw in range(kw_n):             # tap
                    wi = (wp + kw - 1) % width     # circular input column
                    big[kh,
                        wi * cin:(wi + 1) * cin,
                        wp * cout:(wp + 1) * cout] += w[kh, kw]
        return jnp.asarray(big, dtype=compute_dtype)

    def tiled_shift(shift):
        return jnp.asarray(np.tile(np.asarray(shift, np.float32), width),
                           dtype=jnp.float32)[None, :]

    return {
        "w1b": circulant(params["w1"], params["sc1"]),
        "b1": tiled_shift(params["sh1"]),
        "w2b": circulant(params["w2"], params["sc2"]),
        "b2": tiled_shift(params["sh2"]),
    }


# ----------------------------------------------------------------------------
# VMEM budgeting / grid shaping helpers
# ----------------------------------------------------------------------------
def _vmem_capacity_bytes():
    try:
        return int(pltpu.get_tpu_info().vmem_capacity_bytes)
    except Exception:
        return 64 * _MIB      # v7x per-TensorCore physical VMEM (worst case)


def _estimate_vmem_bytes(images, H, WC, WCo, x_bytes, w_bytes):
    win = images * (H + 4) * WC * x_bytes                 # halo-window scratch
    hbuf = (images * (H + 4) - 2) * WCo * 4               # conv1 output scratch
    xin = 2 * images * H * WC * x_bytes                   # double-buffered in
    out = 2 * images * H * WCo * x_bytes                  # double-buffered out
    wts = (3 * WC * WCo + 3 * WCo * WCo + 2 * WCo) * w_bytes   # single-buffered
    acc = 2 * images * (H + 4) * WCo * 4                  # f32 acc / spill slack
    return win + hbuf + xin + out + wts + acc


def _choose_images_per_step(N, H, WC, WCo, x_bytes, w_bytes, budget,
                            target_m=256):
    best = 1
    for tb in range(1, N + 1):
        if N % tb:
            continue
        if tb > 1 and N // tb < 2:
            break       # keep >= 2 parallel grid steps (2 TensorCores on v7x)
        if _estimate_vmem_bytes(tb, H, WC, WCo, x_bytes, w_bytes) > budget:
            break
        best = tb
        if tb * (H + 4) >= target_m:
            break
    return best


# ----------------------------------------------------------------------------
# Lane-dense entry point:  x is (N, H, W*Cin)
# ----------------------------------------------------------------------------
def basic_block_forward_lane_dense(x_ld, params, *, width, end_relu=True,
                                   compute_dtype=jnp.bfloat16,
                                   images_per_step=None):
    N, H, WC = x_ld.shape
    W = int(width)
    assert WC % W == 0
    C = WC // W
    Cout = params["w1"].shape[-1]
    assert params["w1"].shape[2] == C
    assert Cout == C, "residual path requires planes == inplanes (downsample=None)"
    assert H >= 2
    WCo = W * Cout

    compute_dtype = jnp.dtype(compute_dtype)
    prep = _prepare_block_params(params, W, compute_dtype)
    w1b, b1, w2b, b2 = prep["w1b"], prep["b1"], prep["w2b"], prep["b2"]

    x_bytes = jnp.dtype(x_ld.dtype).itemsize
    w_bytes = compute_dtype.itemsize

    cap = _vmem_capacity_bytes()
    budget = (3 * cap) // 4                      # leave headroom (v7x: 48 MiB)

    if images_per_step is None:
        images = _choose_images_per_step(N, H, WC, WCo, x_bytes, w_bytes, budget)
    else:
        images = int(images_per_step)
        if images < 1 or N % images:
            raise ValueError("images_per_step must divide the batch size")
    n_steps = N // images

    est = _estimate_vmem_bytes(images, H, WC, WCo, x_bytes, w_bytes)
    cp_kwargs = dict(dimension_semantics=("parallel",))
    if est > 12 * _MIB:
        # Only raise the scoped-VMEM limit when actually needed, never to the
        # full physical capacity (v7x: 64 MiB/TensorCore).
        cp_kwargs["vmem_limit_bytes"] = int(min(max(2 * est, 32 * _MIB), budget))
    compiler_params = pltpu.CompilerParams(**cp_kwargs)

    kernel = functools.partial(_basic_block_kernel, end_relu=end_relu,
                               images=images, img_h=H,
                               compute_dtype=compute_dtype)

    def run(single_buffer_weights):
        def const_spec(shape, index_map):
            # Weight / bias blocks never change -> single-buffer them.
            if single_buffer_weights:
                return pl.BlockSpec(shape, index_map,
                                    pipeline_mode=pl.Buffered(1))
            return pl.BlockSpec(shape, index_map)

        grid_spec = pltpu.PrefetchScalarGridSpec(
            num_scalar_prefetch=0,
            grid=(n_steps,),
            in_specs=[
                pl.BlockSpec((images, H, WC), lambda g: (g, 0, 0)),
                const_spec((3, WC, WCo), lambda g: (0, 0, 0)),
                const_spec((1, WCo), lambda g: (0, 0)),
                const_spec((3, WCo, WCo), lambda g: (0, 0, 0)),
                const_spec((1, WCo), lambda g: (0, 0)),
            ],
            out_specs=pl.BlockSpec((images, H, WCo), lambda g: (g, 0, 0)),
            scratch_shapes=[
                pltpu.VMEM((images * (H + 4), WC), x_ld.dtype),       # windows
                pltpu.VMEM((images * (H + 4) - 2, WCo), jnp.float32),  # conv1 out
            ],
        )
        out = pl.pallas_call(
            kernel,
            out_shape=jax.ShapeDtypeStruct((N, H, WCo), x_ld.dtype),
            grid_spec=grid_spec,
            compiler_params=compiler_params,
        )(x_ld, w1b, b1, w2b, b2)
        return jax.block_until_ready(out)

    try:
        return run(True)
    except Exception:
        # pipeline_mode / pl.Buffered(1) not supported by this Pallas version:
        # fall back to default (double-buffered) weight specs.
        return run(False)


# ----------------------------------------------------------------------------
# PyTorch-convention wrapper (NCHW in / NCHW out) — for parity testing only.
# Production pipelines should keep activations lane-dense between blocks.
# ----------------------------------------------------------------------------
def basic_block_forward(x_nchw, params, *, end_relu=True,
                        compute_dtype=jnp.bfloat16, images_per_step=None):
    N, C, H, W = x_nchw.shape
    Cout = params["w1"].shape[-1]
    x_ld = jnp.transpose(x_nchw, (0, 2, 3, 1)).reshape(N, H, W * C)
    out_ld = basic_block_forward_lane_dense(
        x_ld, params, width=W, end_relu=end_relu,
        compute_dtype=compute_dtype, images_per_step=images_per_step)
    return jnp.transpose(out_ld.reshape(N, H, W, Cout), (0, 3, 1, 2))


# ----------------------------------------------------------------------------
# Pure-JAX reference (for correctness check)
# ----------------------------------------------------------------------------
def _reference(x_nchw, params, *, end_relu=True):
    x = jnp.transpose(x_nchw, (0, 2, 3, 1))
    dn = jax.lax.conv_dimension_numbers(x.shape, params["w1"].shape,
                                        ("NHWC", "HWIO", "NHWC"))

    def conv(inp, w):
        padded = jnp.pad(inp, ((0, 0), (1, 1), (1, 1), (0, 0)), mode="wrap")
        return jax.lax.conv_general_dilated(padded, w, (1, 1), "VALID",
                                            dimension_numbers=dn)

    h = conv(x, params["w1"]) * params["sc1"] + params["sh1"]
    h = jnp.maximum(h, 0.0)
    o = conv(h, params["w2"]) * params["sc2"] + params["sh2"]
    o = o + x
    if end_relu:
        o = jnp.maximum(o, 0.0)
    return jnp.transpose(o, (0, 3, 1, 2))


# ----------------------------------------------------------------------------
# Deterministic parameter construction
# ----------------------------------------------------------------------------
def make_params(key, inplanes, planes, eps=1e-5):
    ks = jax.random.split(key, 10)

    def conv_w(k, cin, cout):
        # PyTorch OIHW init -> HWIO.
        w = jax.random.normal(k, (cout, cin, 3, 3), jnp.float32) * 0.1
        return jnp.transpose(w, (2, 3, 1, 0))

    def bn(kg, kb, km, kv, c):
        gamma = 1.0 + 0.1 * jax.random.normal(kg, (c,), jnp.float32)
        beta = 0.1 * jax.random.normal(kb, (c,), jnp.float32)
        mean = 0.1 * jax.random.normal(km, (c,), jnp.float32)
        var = jnp.abs(jax.random.normal(kv, (c,), jnp.float32)) + 0.5
        scale = gamma / jnp.sqrt(var + eps)
        shift = beta - mean * scale
        return scale, shift

    sc1, sh1 = bn(ks[2], ks[3], ks[4], ks[5], planes)
    sc2, sh2 = bn(ks[6], ks[7], ks[8], ks[9], planes)
    return {
        "w1": conv_w(ks[0], inplanes, planes),
        "w2": conv_w(ks[1], planes, planes),
        "sc1": sc1, "sh1": sh1,
        "sc2": sc2, "sh2": sh2,
    }


if __name__ == "__main__":
    key = jax.random.PRNGKey(0)
    kx1, kp1, kx2, kp2 = jax.random.split(key, 4)

    # ---- primary config: W*C = 128 lanes (lane-dense stores), bf16 MXU -----
    N, C, H, W = 2, 8, 16, 16          # inplanes = planes = 8, stride = 1
    x = jax.random.normal(kx1, (N, C, H, W), jnp.float32)
    params = make_params(kp1, C, C)
    ref = jax.block_until_ready(_reference(x, params, end_relu=True))

    out_bf16 = jax.block_until_ready(
        basic_block_forward(x, params, end_relu=True,
                            compute_dtype=jnp.bfloat16))
    np.testing.assert_allclose(np.asarray(out_bf16), np.asarray(ref),
                               rtol=5e-2, atol=5e-2)

    out_f32 = jax.block_until_ready(
        basic_block_forward(x, params, end_relu=True,
                            compute_dtype=jnp.float32))
    np.testing.assert_allclose(np.asarray(out_f32), np.asarray(ref),
                               rtol=1e-3, atol=1e-3)

    # ---- secondary config: fold 2 images into the matmul M dimension -------
    N2, C2, H2, W2 = 4, 4, 8, 16
    x2 = jax.random.normal(kx2, (N2, C2, H2, W2), jnp.float32)
    params2 = make_params(kp2, C2, C2)
    out2 = jax.block_until_ready(
        basic_block_forward(x2, params2, end_relu=False,
                            compute_dtype=jnp.float32, images_per_step=2))
    ref2 = jax.block_until_ready(_reference(x2, params2, end_relu=False))
    np.testing.assert_allclose(np.asarray(out2), np.asarray(ref2),
                               rtol=1e-3, atol=1e-3)

    print("KERNEL_OK")
</pallas_src>

<mosaic_0001>
module attributes {stable_mosaic.version = 11 : i64} {
  func.func @_basic_block_kernel(%arg0: i32, %arg1: memref<1x16x128xf32, #tpu.memory_space<vmem>>, %arg2: memref<3x128x128xbf16, #tpu.memory_space<vmem>>, %arg3: memref<1x128xf32, #tpu.memory_space<vmem>>, %arg4: memref<3x128x128xbf16, #tpu.memory_space<vmem>>, %arg5: memref<1x128xf32, #tpu.memory_space<vmem>>, %arg6: memref<1x16x128xf32, #tpu.memory_space<vmem>>, %arg7: memref<20x128xf32, #tpu.memory_space<vmem>>, %arg8: memref<18x128xf32, #tpu.memory_space<vmem>>) attributes {dimension_semantics = [#tpu.dimension_semantics<parallel>], iteration_bounds = array<i64: 2>, scalar_prefetch = 0 : i64, scratch_operands = 2 : i64, tpu.core_type = #tpu.core_type<tc>, window_params = [{transform_indices = @transform_0, window_bounds = array<i64: 1, 16, 128>}, {pipeline_mode = #tpu.pipeline_mode<synchronous>, transform_indices = @transform_1, window_bounds = array<i64: 3, 128, 128>}, {pipeline_mode = #tpu.pipeline_mode<synchronous>, transform_indices = @transform_2, window_bounds = array<i64: 1, 128>}, {pipeline_mode = #tpu.pipeline_mode<synchronous>, transform_indices = @transform_3, window_bounds = array<i64: 3, 128, 128>}, {pipeline_mode = #tpu.pipeline_mode<synchronous>, transform_indices = @transform_4, window_bounds = array<i64: 1, 128>}, {transform_indices = @transform_5, window_bounds = array<i64: 1, 16, 128>}]} {
    %c0 = arith.constant 0 : index
    %c14 = arith.constant 14 : index
    %c0_0 = arith.constant 0 : index
    %0 = vector.load %arg1[%c0, %c14, %c0_0] : memref<1x16x128xf32, #tpu.memory_space<vmem>>, vector<1x2x128xf32>
    %1 = vector.shape_cast %0 : vector<1x2x128xf32> to vector<2x128xf32>
    %c0_1 = arith.constant 0 : index
    %c0_2 = arith.constant 0 : index
    %2 = vector.load %arg7[%c0_1, %c0_2] : memref<20x128xf32, #tpu.memory_space<vmem>>, vector<2x128xf32>
    tpu.vector_store %arg7[%c0_1, %c0_2], %1 {strides = array<i32>} : memref<20x128xf32, #tpu.memory_space<vmem>>, vector<2x128xf32>,
    %c0_3 = arith.constant 0 : index
    %c0_4 = arith.constant 0 : index
    %c0_5 = arith.constant 0 : index
    %3 = vector.load %arg1[%c0_3, %c0_4, %c0_5] : memref<1x16x128xf32, #tpu.memory_space<vmem>>, vector<1x16x128xf32>
    %4 = vector.shape_cast %3 : vector<1x16x128xf32> to vector<16x128xf32>
    %c2 = arith.constant 2 : index
    %c0_6 = arith.constant 0 : index
    %5 = vector.load %arg7[%c2, %c0_6] : memref<20x128xf32, #tpu.memory_space<vmem>>, vector<16x128xf32>
    tpu.vector_store %arg7[%c2, %c0_6], %4 {strides = array<i32>} : memref<20x128xf32, #tpu.memory_space<vmem>>, vector<16x128xf32>,
    %c0_7 = arith.constant 0 : index
    %c0_8 = arith.constant 0 : index
    %c0_9 = arith.constant 0 : index
    %6 = vector.load %arg1[%c0_7, %c0_8, %c0_9] : memref<1x16x128xf32, #tpu.memory_space<vmem>>, vector<1x2x128xf32>
    %7 = vector.shape_cast %6 : vector<1x2x128xf32> to vector<2x128xf32>
    %c18 = arith.constant 18 : index
    %c0_10 = arith.constant 0 : index
    %8 = vector.load %arg7[%c18, %c0_10] : memref<20x128xf32, #tpu.memory_space<vmem>>, vector<2x128xf32>
    tpu.vector_store %arg7[%c18, %c0_10], %7 {strides = array<i32>} : memref<20x128xf32, #tpu.memory_space<vmem>>, vector<2x128xf32>,
    %c0_11 = arith.constant 0 : index
    %c0_12 = arith.constant 0 : index
    %9 = vector.load %arg7[%c0_11, %c0_12] : memref<20x128xf32, #tpu.memory_space<vmem>>, vector<18x128xf32>
    %10 = arith.truncf %9 : vector<18x128xf32> to vector<18x128xbf16>
    %c0_13 = arith.constant 0 : index
    %c0_14 = arith.constant 0 : index
    %c0_15 = arith.constant 0 : index
    %11 = vector.load %arg2[%c0_13, %c0_14, %c0_15] : memref<3x128x128xbf16, #tpu.memory_space<vmem>>, vector<1x128x128xbf16>
    %12 = vector.shape_cast %11 : vector<1x128x128xbf16> to vector<128x128xbf16>
    %cst = arith.constant dense<0.000000e+00> : vector<18x128xf32>
    %13 = tpu.matmul %10, %12, %cst {dimension_numbers = #tpu.dot_dimension_numbers<[1], [0], [0], [1], [0, 0, 1, 1], [], []>} : vector<18x128xbf16>, vector<128x128xbf16>, vector<18x128xf32> -> vector<18x128xf32>
    %c1 = arith.constant 1 : index
    %c0_16 = arith.constant 0 : index
    %14 = vector.load %arg7[%c1, %c0_16] : memref<20x128xf32, #tpu.memory_space<vmem>>, vector<18x128xf32>
    %15 = arith.truncf %14 : vector<18x128xf32> to vector<18x128xbf16>
    %c1_17 = arith.constant 1 : index
    %c0_18 = arith.constant 0 : index
    %c0_19 = arith.constant 0 : index
    %16 = vector.load %arg2[%c1_17, %c0_18, %c0_19] : memref<3x128x128xbf16, #tpu.memory_space<vmem>>, vector<1x128x128xbf16>
    %17 = vector.shape_cast %16 : vector<1x128x128xbf16> to vector<128x128xbf16>
    %cst_20 = arith.constant dense<0.000000e+00> : vector<18x128xf32>
    %18 = tpu.matmul %15, %17, %cst_20 {dimension_numbers = #tpu.dot_dimension_numbers<[1], [0], [0], [1], [0, 0, 1, 1], [], []>} : vector<18x128xbf16>, vector<128x128xbf16>, vector<18x128xf32> -> vector<18x128xf32>
    %19 = arith.addf %13, %18 : vector<18x128xf32>
    %c2_21 = arith.constant 2 : index
    %c0_22 = arith.constant 0 : index
    %20 = vector.load %arg7[%c2_21, %c0_22] : memref<20x128xf32, #tpu.memory_space<vmem>>, vector<18x128xf32>
    %21 = arith.truncf %20 : vector<18x128xf32> to vector<18x128xbf16>
    %c2_23 = arith.constant 2 : index
    %c0_24 = arith.constant 0 : index
    %c0_25 = arith.constant 0 : index
    %22 = vector.load %arg2[%c2_23, %c0_24, %c0_25] : memref<3x128x128xbf16, #tpu.memory_space<vmem>>, vector<1x128x128xbf16>
    %23 = vector.shape_cast %22 : vector<1x128x128xbf16> to vector<128x128xbf16>
    %cst_26 = arith.constant dense<0.000000e+00> : vector<18x128xf32>
    %24 = tpu.matmul %21, %23, %cst_26 {dimension_numbers = #tpu.dot_dimension_numbers<[1], [0], [0], [1], [0, 0, 1, 1], [], []>} : vector<18x128xbf16>, vector<128x128xbf16>, vector<18x128xf32> -> vector<18x128xf32>
    %25 = arith.addf %19, %24 : vector<18x128xf32>
    %c0_27 = arith.constant 0 : index
    %c0_28 = arith.constant 0 : index
    %26 = vector.load %arg3[%c0_27, %c0_28] : memref<1x128xf32, #tpu.memory_space<vmem>>, vector<1x128xf32>
    %27 = vector.broadcast %26 : vector<1x128xf32> to vector<18x128xf32>
    %28 = arith.addf %25, %27 : vector<18x128xf32>
    %cst_29 = arith.constant 0.000000e+00 : f32
    %29 = vector.broadcast %cst_29 : f32 to vector<18x128xf32>
    %30 = arith.maximumf %28, %29 : vector<18x128xf32>
    %c0_30 = arith.constant 0 : index
    %c0_31 = arith.constant 0 : index
    %31 = vector.load %arg8[%c0_30, %c0_31] : memref<18x128xf32, #tpu.memory_space<vmem>>, vector<18x128xf32>
    tpu.vector_store %arg8[%c0_30, %c0_31], %30 {strides = array<i32>} : memref<18x128xf32, #tpu.memory_space<vmem>>, vector<18x128xf32>,
    %c0_32 = arith.constant 0 : index
    %c0_33 = arith.constant 0 : index
    %32 = vector.load %arg8[%c0_32, %c0_33] : memref<18x128xf32, #tpu.memory_space<vmem>>, vector<16x128xf32>
    %33 = arith.truncf %32 : vector<16x128xf32> to vector<16x128xbf16>
    %c0_34 = arith.constant 0 : index
    %c0_35 = arith.constant 0 : index
    %c0_36 = arith.constant 0 : index
    %34 = vector.load %arg4[%c0_34, %c0_35, %c0_36] : memref<3x128x128xbf16, #tpu.memory_space<vmem>>, vector<1x128x128xbf16>
    %35 = vector.shape_cast %34 : vector<1x128x128xbf16> to vector<128x128xbf16>
    %cst_37 = arith.constant dense<0.000000e+00> : vector<16x128xf32>
    %36 = tpu.matmul %33, %35, %cst_37 {dimension_numbers = #tpu.dot_dimension_numbers<[1], [0], [0], [1], [0, 0, 1, 1], [], []>} : vector<16x128xbf16>, vector<128x128xbf16>, vector<16x128xf32> -> vector<16x128xf32>
    %c1_38 = arith.constant 1 : index
    %c0_39 = arith.constant 0 : index
    %37 = vector.load %arg8[%c1_38, %c0_39] : memref<18x128xf32, #tpu.memory_space<vmem>>, vector<16x128xf32>
    %38 = arith.truncf %37 : vector<16x128xf32> to vector<16x128xbf16>
    %c1_40 = arith.constant 1 : index
    %c0_41 = arith.constant 0 : index
    %c0_42 = arith.constant 0 : index
    %39 = vector.load %arg4[%c1_40, %c0_41, %c0_42] : memref<3x128x128xbf16, #tpu.memory_space<vmem>>, vector<1x128x128xbf16>
    %40 = vector.shape_cast %39 : vector<1x128x128xbf16> to vector<128x128xbf16>
    %cst_43 = arith.constant dense<0.000000e+00> : vector<16x128xf32>
    %41 = tpu.matmul %38, %40, %cst_43 {dimension_numbers = #tpu.dot_dimension_numbers<[1], [0], [0], [1], [0, 0, 1, 1], [], []>} : vector<16x128xbf16>, vector<128x128xbf16>, vector<16x128xf32> -> vector<16x128xf32>
    %42 = arith.addf %36, %41 : vector<16x128xf32>
    %c2_44 = arith.constant 2 : index
    %c0_45 = arith.constant 0 : index
    %43 = vector.load %arg8[%c2_44, %c0_45] : memref<18x128xf32, #tpu.memory_space<vmem>>, vector<16x128xf32>
    %44 = arith.truncf %43 : vector<16x128xf32> to vector<16x128xbf16>
    %c2_46 = arith.constant 2 : index
    %c0_47 = arith.constant 0 : index
    %c0_48 = arith.constant 0 : index
    %45 = vector.load %arg4[%c2_46, %c0_47, %c0_48] : memref<3x128x128xbf16, #tpu.memory_space<vmem>>, vector<1x128x128xbf16>
    %46 = vector.shape_cast %45 : vector<1x128x128xbf16> to vector<128x128xbf16>
    %cst_49 = arith.constant dense<0.000000e+00> : vector<16x128xf32>
    %47 = tpu.matmul %44, %46, %cst_49 {dimension_numbers = #tpu.dot_dimension_numbers<[1], [0], [0], [1], [0, 0, 1, 1], [], []>} : vector<16x128xbf16>, vector<128x128xbf16>, vector<16x128xf32> -> vector<16x128xf32>
    %48 = arith.addf %42, %47 : vector<16x128xf32>
    %c0_50 = arith.constant 0 : index
    %c0_51 = arith.constant 0 : index
    %49 = vector.load %arg5[%c0_50, %c0_51] : memref<1x128xf32, #tpu.memory_space<vmem>>, vector<1x128xf32>
    %50 = vector.broadcast %49 : vector<1x128xf32> to vector<16x128xf32>
    %51 = arith.addf %48, %50 : vector<16x128xf32>
    %c0_52 = arith.constant 0 : index
    %c0_53 = arith.constant 0 : index
    %c0_54 = arith.constant 0 : index
    %52 = vector.load %arg1[%c0_52, %c0_53, %c0_54] : memref<1x16x128xf32, #tpu.memory_space<vmem>>, vector<1x16x128xf32>
    %53 = vector.shape_cast %52 : vector<1x16x128xf32> to vector<16x128xf32>
    %54 = arith.addf %51, %53 : vector<16x128xf32>
    %cst_55 = arith.constant 0.000000e+00 : f32
    %55 = vector.broadcast %cst_55 : f32 to vector<16x128xf32>
    %56 = arith.maximumf %54, %55 : vector<16x128xf32>
    %c0_56 = arith.constant 0 : index
    %c0_57 = arith.constant 0 : index
    %c0_58 = arith.constant 0 : index
    %57 = vector.load %arg6[%c0_56, %c0_57, %c0_58] : memref<1x16x128xf32, #tpu.memory_space<vmem>>, vector<1x16x128xf32>
    %58 = vector.shape_cast %57 : vector<1x16x128xf32> to vector<16x128xf32>
    %59 = vector.shape_cast %56 : vector<16x128xf32> to vector<1x16x128xf32>
    tpu.vector_store %arg6[%c0_56, %c0_57, %c0_58], %59 {strides = array<i32>} : memref<1x16x128xf32, #tpu.memory_space<vmem>>, vector<1x16x128xf32>,
    return
  }
  func.func @transform_0(%arg0: i32) -> (i32, i32, i32) {
    %c0_i32 = arith.constant 0 : i32
    %c0_i32_0 = arith.constant 0 : i32
    %c0_i32_1 = arith.constant 0 : i32
    return %arg0, %c0_i32, %c0_i32_0 : i32, i32, i32
  }
  func.func @transform_1(%arg0: i32) -> (i32, i32, i32) {
    %c0_i32 = arith.constant 0 : i32
    %c0_i32_0 = arith.constant 0 : i32
    %c0_i32_1 = arith.constant 0 : i32
    %c0_i32_2 = arith.constant 0 : i32
    return %c0_i32, %c0_i32_0, %c0_i32_1 : i32, i32, i32
  }
  func.func @transform_2(%arg0: i32) -> (i32, i32) {
    %c0_i32 = arith.constant 0 : i32
    %c0_i32_0 = arith.constant 0 : i32
    %c0_i32_1 = arith.constant 0 : i32
    return %c0_i32, %c0_i32_0 : i32, i32
  }
  func.func @transform_3(%arg0: i32) -> (i32, i32, i32) {
    %c0_i32 = arith.constant 0 : i32
    %c0_i32_0 = arith.constant 0 : i32
    %c0_i32_1 = arith.constant 0 : i32
    %c0_i32_2 = arith.constant 0 : i32
    return %c0_i32, %c0_i32_0, %c0_i32_1 : i32, i32, i32
  }
  func.func @transform_4(%arg0: i32) -> (i32, i32) {
    %c0_i32 = arith.constant 0 : i32
    %c0_i32_0 = arith.constant 0 : i32
    %c0_i32_1 = arith.constant 0 : i32
    return %c0_i32, %c0_i32_0 : i32, i32
  }
  func.func @transform_5(%arg0: i32) -> (i32, i32, i32) {
    %c0_i32 = arith.constant 0 : i32
    %c0_i32_0 = arith.constant 0 : i32
    %c0_i32_1 = arith.constant 0 : i32
    return %arg0, %c0_i32, %c0_i32_0 : i32, i32, i32
  }
}

module attributes {stable_mosaic.version = 11 : i64} {
  func.func @_basic_block_kernel(%arg0: i32, %arg1: memref<1x16x128xf32, #tpu.memory_space<vmem>>, %arg2: memref<3x128x128xbf16, #tpu.memory_space<vmem>>, %arg3: memref<1x128xf32, #tpu.memory_space<vmem>>, %arg4: memref<3x128x128xbf16, #tpu.memory_space<vmem>>, %arg5: memref<1x128xf32, #tpu.memory_space<vmem>>, %arg6: memref<1x16x128xf32, #tpu.memory_space<vmem>>, %arg7: memref<20x128xf32, #tpu.memory_space<vmem>>, %arg8: memref<18x128xf32, #tpu.memory_space<vmem>>) attributes {dimension_semantics = [#tpu.dimension_semantics<parallel>], iteration_bounds = array<i64: 2>, scalar_prefetch = 0 : i64, scratch_operands = 2 : i64, tpu.core_type = #tpu.core_type<tc>, window_params = [{transform_indices = @transform_0, window_bounds = array<i64: 1, 16, 128>}, {pipeline_mode = #tpu.pipeline_mode<synchronous>, transform_indices = @transform_1, window_bounds = array<i64: 3, 128, 128>}, {pipeline_mode = #tpu.pipeline_mode<synchronous>, transform_indices = @transform_2, window_bounds = array<i64: 1, 128>}, {pipeline_mode = #tpu.pipeline_mode<synchronous>, transform_indices = @transform_3, window_bounds = array<i64: 3, 128, 128>}, {pipeline_mode = #tpu.pipeline_mode<synchronous>, transform_indices = @transform_4, window_bounds = array<i64: 1, 128>}, {transform_indices = @transform_5, window_bounds = array<i64: 1, 16, 128>}]} {
    %c0 = arith.constant 0 : index
    %c14 = arith.constant 14 : index
    %c0_0 = arith.constant 0 : index
    %0 = vector.load %arg1[%c0, %c14, %c0_0] : memref<1x16x128xf32, #tpu.memory_space<vmem>>, vector<1x2x128xf32>
    %1 = vector.shape_cast %0 : vector<1x2x128xf32> to vector<2x128xf32>
    %c0_1 = arith.constant 0 : index
    %c0_2 = arith.constant 0 : index
    %2 = vector.load %arg7[%c0_1, %c0_2] : memref<20x128xf32, #tpu.memory_space<vmem>>, vector<2x128xf32>
    tpu.vector_store %arg7[%c0_1, %c0_2], %1 {strides = array<i32>} : memref<20x128xf32, #tpu.memory_space<vmem>>, vector<2x128xf32>,
    %c0_3 = arith.constant 0 : index
    %c0_4 = arith.constant 0 : index
    %c0_5 = arith.constant 0 : index
    %3 = vector.load %arg1[%c0_3, %c0_4, %c0_5] : memref<1x16x128xf32, #tpu.memory_space<vmem>>, vector<1x16x128xf32>
    %4 = vector.shape_cast %3 : vector<1x16x128xf32> to vector<16x128xf32>
    %c2 = arith.constant 2 : index
    %c0_6 = arith.constant 0 : index
    %5 = vector.load %arg7[%c2, %c0_6] : memref<20x128xf32, #tpu.memory_space<vmem>>, vector<16x128xf32>
    tpu.vector_store %arg7[%c2, %c0_6], %4 {strides = array<i32>} : memref<20x128xf32, #tpu.memory_space<vmem>>, vector<16x128xf32>,
    %c0_7 = arith.constant 0 : index
    %c0_8 = arith.constant 0 : index
    %c0_9 = arith.constant 0 : index
    %6 = vector.load %arg1[%c0_7, %c0_8, %c0_9] : memref<1x16x128xf32, #tpu.memory_space<vmem>>, vector<1x2x128xf32>
    %7 = vector.shape_cast %6 : vector<1x2x128xf32> to vector<2x128xf32>
    %c18 = arith.constant 18 : index
    %c0_10 = arith.constant 0 : index
    %8 = vector.load %arg7[%c18, %c0_10] : memref<20x128xf32, #tpu.memory_space<vmem>>, vector<2x128xf32>
    tpu.vector_store %arg7[%c18, %c0_10], %7 {strides = array<i32>} : memref<20x128xf32, #tpu.memory_space<vmem>>, vector<2x128xf32>,
    %c0_11 = arith.constant 0 : index
    %c0_12 = arith.constant 0 : index
    %9 = vector.load %arg7[%c0_11, %c0_12] : memref<20x128xf32, #tpu.memory_space<vmem>>, vector<18x128xf32>
    %10 = arith.truncf %9 : vector<18x128xf32> to vector<18x128xbf16>
    %c0_13 = arith.constant 0 : index
    %c0_14 = arith.constant 0 : index
    %c0_15 = arith.constant 0 : index
    %11 = vector.load %arg2[%c0_13, %c0_14, %c0_15] : memref<3x128x128xbf16, #tpu.memory_space<vmem>>, vector<1x128x128xbf16>
    %12 = vector.shape_cast %11 : vector<1x128x128xbf16> to vector<128x128xbf16>
    %cst = arith.constant dense<0.000000e+00> : vector<18x128xf32>
    %13 = tpu.matmul %10, %12, %cst {dimension_numbers = #tpu.dot_dimension_numbers<[1], [0], [0], [1], [0, 0, 1, 1], [], []>} : vector<18x128xbf16>, vector<128x128xbf16>, vector<18x128xf32> -> vector<18x128xf32>
    %c1 = arith.constant 1 : index
    %c0_16 = arith.constant 0 : index
    %14 = vector.load %arg7[%c1, %c0_16] : memref<20x128xf32, #tpu.memory_space<vmem>>, vector<18x128xf32>
    %15 = arith.truncf %14 : vector<18x128xf32> to vector<18x128xbf16>
    %c1_17 = arith.constant 1 : index
    %c0_18 = arith.constant 0 : index
    %c0_19 = arith.constant 0 : index
    %16 = vector.load %arg2[%c1_17, %c0_18, %c0_19] : memref<3x128x128xbf16, #tpu.memory_space<vmem>>, vector<1x128x128xbf16>
    %17 = vector.shape_cast %16 : vector<1x128x128xbf16> to vector<128x128xbf16>
    %cst_20 = arith.constant dense<0.000000e+00> : vector<18x128xf32>
    %18 = tpu.matmul %15, %17, %cst_20 {dimension_numbers = #tpu.dot_dimension_numbers<[1], [0], [0], [1], [0, 0, 1, 1], [], []>} : vector<18x128xbf16>, vector<128x128xbf16>, vector<18x128xf32> -> vector<18x128xf32>
    %19 = arith.addf %13, %18 : vector<18x128xf32>
    %c2_21 = arith.constant 2 : index
    %c0_22 = arith.constant 0 : index
    %20 = vector.load %arg7[%c2_21, %c0_22] : memref<20x128xf32, #tpu.memory_space<vmem>>, vector<18x128xf32>
    %21 = arith.truncf %20 : vector<18x128xf32> to vector<18x128xbf16>
    %c2_23 = arith.constant 2 : index
    %c0_24 = arith.constant 0 : index
    %c0_25 = arith.constant 0 : index
    %22 = vector.load %arg2[%c2_23, %c0_24, %c0_25] : memref<3x128x128xbf16, #tpu.memory_space<vmem>>, vector<1x128x128xbf16>
    %23 = vector.shape_cast %22 : vector<1x128x128xbf16> to vector<128x128xbf16>
    %cst_26 = arith.constant dense<0.000000e+00> : vector<18x128xf32>
    %24 = tpu.matmul %21, %23, %cst_26 {dimension_numbers = #tpu.dot_dimension_numbers<[1], [0], [0], [1], [0, 0, 1, 1], [], []>} : vector<18x128xbf16>, vector<128x128xbf16>, vector<18x128xf32> -> vector<18x128xf32>
    %25 = arith.addf %19, %24 : vector<18x128xf32>
    %c0_27 = arith.constant 0 : index
    %c0_28 = arith.constant 0 : index
    %26 = vector.load %arg3[%c0_27, %c0_28] : memref<1x128xf32, #tpu.memory_space<vmem>>, vector<1x128xf32>
    %27 = vector.broadcast %26 : vector<1x128xf32> to vector<18x128xf32>
    %28 = arith.addf %25, %27 : vector<18x128xf32>
    %cst_29 = arith.constant 0.000000e+00 : f32
    %29 = vector.broadcast %cst_29 : f32 to vector<18x128xf32>
    %30 = arith.maximumf %28, %29 : vector<18x128xf32>
    %c0_30 = arith.constant 0 : index
    %c0_31 = arith.constant 0 : index
    %31 = vector.load %arg8[%c0_30, %c0_31] : memref<18x128xf32, #tpu.memory_space<vmem>>, vector<18x128xf32>
    tpu.vector_store %arg8[%c0_30, %c0_31], %30 {strides = array<i32>} : memref<18x128xf32, #tpu.memory_space<vmem>>, vector<18x128xf32>,
    %c0_32 = arith.constant 0 : index
    %c0_33 = arith.constant 0 : index
    %32 = vector.load %arg8[%c0_32, %c0_33] : memref<18x128xf32, #tpu.memory_space<vmem>>, vector<16x128xf32>
    %33 = arith.truncf %32 : vector<16x128xf32> to vector<16x128xbf16>
    %c0_34 = arith.constant 0 : index
    %c0_35 = arith.constant 0 : index
    %c0_36 = arith.constant 0 : index
    %34 = vector.load %arg4[%c0_34, %c0_35, %c0_36] : memref<3x128x128xbf16, #tpu.memory_space<vmem>>, vector<1x128x128xbf16>
    %35 = vector.shape_cast %34 : vector<1x128x128xbf16> to vector<128x128xbf16>
    %cst_37 = arith.constant dense<0.000000e+00> : vector<16x128xf32>
    %36 = tpu.matmul %33, %35, %cst_37 {dimension_numbers = #tpu.dot_dimension_numbers<[1], [0], [0], [1], [0, 0, 1, 1], [], []>} : vector<16x128xbf16>, vector<128x128xbf16>, vector<16x128xf32> -> vector<16x128xf32>
    %c1_38 = arith.constant 1 : index
    %c0_39 = arith.constant 0 : index
    %37 = vector.load %arg8[%c1_38, %c0_39] : memref<18x128xf32, #tpu.memory_space<vmem>>, vector<16x128xf32>
    %38 = arith.truncf %37 : vector<16x128xf32> to vector<16x128xbf16>
    %c1_40 = arith.constant 1 : index
    %c0_41 = arith.constant 0 : index
    %c0_42 = arith.constant 0 : index
    %39 = vector.load %arg4[%c1_40, %c0_41, %c0_42] : memref<3x128x128xbf16, #tpu.memory_space<vmem>>, vector<1x128x128xbf16>
    %40 = vector.shape_cast %39 : vector<1x128x128xbf16> to vector<128x128xbf16>
    %cst_43 = arith.constant dense<0.000000e+00> : vector<16x128xf32>
    %41 = tpu.matmul %38, %40, %cst_43 {dimension_numbers = #tpu.dot_dimension_numbers<[1], [0], [0], [1], [0, 0, 1, 1], [], []>} : vector<16x128xbf16>, vector<128x128xbf16>, vector<16x128xf32> -> vector<16x128xf32>
    %42 = arith.addf %36, %41 : vector<16x128xf32>
    %c2_44 = arith.constant 2 : index
    %c0_45 = arith.constant 0 : index
    %43 = vector.load %arg8[%c2_44, %c0_45] : memref<18x128xf32, #tpu.memory_space<vmem>>, vector<16x128xf32>
    %44 = arith.truncf %43 : vector<16x128xf32> to vector<16x128xbf16>
    %c2_46 = arith.constant 2 : index
    %c0_47 = arith.constant 0 : index
    %c0_48 = arith.constant 0 : index
    %45 = vector.load %arg4[%c2_46, %c0_47, %c0_48] : memref<3x128x128xbf16, #tpu.memory_space<vmem>>, vector<1x128x128xbf16>
    %46 = vector.shape_cast %45 : vector<1x128x128xbf16> to vector<128x128xbf16>
    %cst_49 = arith.constant dense<0.000000e+00> : vector<16x128xf32>
    %47 = tpu.matmul %44, %46, %cst_49 {dimension_numbers = #tpu.dot_dimension_numbers<[1], [0], [0], [1], [0, 0, 1, 1], [], []>} : vector<16x128xbf16>, vector<128x128xbf16>, vector<16x128xf32> -> vector<16x128xf32>
    %48 = arith.addf %42, %47 : vector<16x128xf32>
    %c0_50 = arith.constant 0 : index
    %c0_51 = arith.constant 0 : index
    %49 = vector.load %arg5[%c0_50, %c0_51] : memref<1x128xf32, #tpu.memory_space<vmem>>, vector<1x128xf32>
    %50 = vector.broadcast %49 : vector<1x128xf32> to vector<16x128xf32>
    %51 = arith.addf %48, %50 : vector<16x128xf32>
    %c0_52 = arith.constant 0 : index
    %c0_53 = arith.constant 0 : index
    %c0_54 = arith.constant 0 : index
    %52 = vector.load %arg1[%c0_52, %c0_53, %c0_54] : memref<1x16x128xf32, #tpu.memory_space<vmem>>, vector<1x16x128xf32>
    %53 = vector.shape_cast %52 : vector<1x16x128xf32> to vector<16x128xf32>
    %54 = arith.addf %51, %53 : vector<16x128xf32>
    %cst_55 = arith.constant 0.000000e+00 : f32
    %55 = vector.broadcast %cst_55 : f32 to vector<16x128xf32>
    %56 = arith.maximumf %54, %55 : vector<16x128xf32>
    %c0_56 = arith.constant 0 : index
    %c0_57 = arith.constant 0 : index
    %c0_58 = arith.constant 0 : index
    %57 = vector.load %arg6[%c0_56, %c0_57, %c0_58] : memref<1x16x128xf32, #tpu.memory_space<vmem>>, vector<1x16x128xf32>
    %58 = vector.shape_cast %57 : vector<1x16x128xf32> to vector<16x128xf32>
    %59 = vector.shape_cast %56 : vector<16x128xf32> to vector<1x16x128xf32>
    tpu.vector_store %arg6[%c0_56, %c0_57, %c0_58], %59 {strides = array<i32>} : memref<1x16x128xf32, #tpu.memory_space<vmem>>, vector<1x16x128xf32>,
    return
  }
  func.func @transform_0(%arg0: i32) -> (i32, i32, i32) {
    %c0_i32 = arith.constant 0 : i32
    %c0_i32_0 = arith.constant 0 : i32
    %c0_i32_1 = arith.constant 0 : i32
    return %arg0, %c0_i32, %c0_i32_0 : i32, i32, i32
  }
  func.func @transform_1(%arg0: i32) -> (i32, i32, i32) {
    %c0_i32 = arith.constant 0 : i32
    %c0_i32_0 = arith.constant 0 : i32
    %c0_i32_1 = arith.constant 0 : i32
    %c0_i32_2 = arith.constant 0 : i32
    return %c0_i32, %c0_i32_0, %c0_i32_1 : i32, i32, i32
  }
  func.func @transform_2(%arg0: i32) -> (i32, i32) {
    %c0_i32 = arith.constant 0 : i32
    %c0_i32_0 = arith.constant 0 : i32
    %c0_i32_1 = arith.constant 0 : i32
    return %c0_i32, %c0_i32_0 : i32, i32
  }
  func.func @transform_3(%arg0: i32) -> (i32, i32, i32) {
    %c0_i32 = arith.constant 0 : i32
    %c0_i32_0 = arith.constant 0 : i32
    %c0_i32_1 = arith.constant 0 : i32
    %c0_i32_2 = arith.constant 0 : i32
    return %c0_i32, %c0_i32_0, %c0_i32_1 : i32, i32, i32
  }
  func.func @transform_4(%arg0: i32) -> (i32, i32) {
    %c0_i32 = arith.constant 0 : i32
    %c0_i32_0 = arith.constant 0 : i32
    %c0_i32_1 = arith.constant 0 : i32
    return %c0_i32, %c0_i32_0 : i32, i32
  }
  func.func @transform_5(%arg0: i32) -> (i32, i32, i32) {
    %c0_i32 = arith.constant 0 : i32
    %c0_i32_0 = arith.constant 0 : i32
    %c0_i32_1 = arith.constant 0 : i32
    return %arg0, %c0_i32, %c0_i32_0 : i32, i32, i32
  }
}

</mosaic_0001>

<bundles_post_ra>
// kernel: tpu_custom_call.1
= control target key start
LH: loop header
LB: loop body
LE: loop exit
PB: predicated region body
PF: predicated region fallthrough
CT: control target
= control target key end

     0   :  { %10 = vsyncpa [#allocation5], 0  ;;  %s1964_s0 = inlined_call_operand.hbm [shape: f32[2,16,128], index: 0, kind: input, shape index: {}]   ;;  %s1965_s1 = inlined_call_operand.hbm [shape: bf16[3,128,128], index: 1, kind: input, shape index: {}]   ;;  %s1966_s2 = inlined_call_operand.vmem [shape: f32[1,128], index: 2, kind: input, shape index: {}]   ;;  %s1967_s3 = inlined_call_operand.hbm [shape: bf16[3,128,128], index: 3, kind: input, shape index: {}]   ;;  %s1968_s4 = inlined_call_operand.vmem [shape: f32[1,128], index: 4, kind: input, shape index: {}]   ;;  %s1969_s5 = inlined_call_operand.hbm [shape: f32[2,16,128], index: 5, kind: output, shape index: {}]  }
   0x1   :  { %12 = vsyncpa [#allocation5 + $0x1], 0 }
   0x2   :  { %13 = vsyncpa [#allocation8], 0 }
   0x3   :  { %14 = vsyncpa [#allocation6], 0 }
   0x4   :  { %16 = vsyncpa [#allocation6 + $0x1], 0  ;;  %s1674_s18 = smov 0   ;;  %s1676_s19 = smov 0  }
   0x5   :  { %s1678_s20 = smov 0   ;;  %s1680_s21 = smov 0  }
   0x6 LB: > { %s1695_s22 = sadd.s32 4294967295, %s1630_s21   ;;  %s1104_s23 = sadd.s32 4294967294, %s1630_s21   ;;  %s1630_s21 = sphi %s1680_s21, %s1989_s21   ;;  %s1626_s20 = sphi %s1678_s20, %s1988_s20   ;;  %s1622_s19 = sphi %s1676_s19, %s1987_s19   ;;  %s1618_s18 = sphi %s1674_s18, %s1986_s18  }
   0x7   : > { %p42_p0 = scmp.ne.s32.totalorder %s1622_s19, %s1618_s18  ;;  %p1970_p1 = scmp.eq.s32.totalorder %s1695_s22, 0 }
   0x8   : > { %p156_p3 = scmp.eq.s32.totalorder %s1104_s23, 1  ;;  %p1105_p5 = scmp.ge.s32.totalorder %s1630_s21, 1 }
   0x9   : > { %p1704_p4 = por %p1970_p1, %p42_p0  ;;  %p163_p7 = scmp.lt.s32.totalorder %s1630_s21, 3 }
   0xa   : > { %p1709_p6 = por %p156_p3, %p42_p0  ;;  %s1632_s27 = smov [#allocation7]  }
   0xb   : > { %s1973_s24 = scalar_select %p1704_p4, 1, 0 }
   0xc   : > { %s1974_s25 = scalar_select %p1709_p6, 1, 0 }
   0xd   : > { %p1714_p8 = pnand %p1105_p5, %p163_p7  ;;  %s175_s28 = sshll.u32 %s1632_s27, 4  ;;  %s1718_s28 = int_to_ptr.vmem [resolvable:$true] %s175_s28 }
   0xe   : > { %s1633_s30 = smov [#allocation9]   ;;  %s1474_s9 = scalar_lea.hbm %s1965_s1, 3072 }
   0xf   : > { %p1363_p9 = pneg %p1714_p8  ;;  %s191_s6 = sshll.u32 %s1633_s30, 4  ;;  %s1729_s6 = int_to_ptr.vmem [resolvable:$true] %s191_s6 }
  0x10   : > { %p1475_p12 = scmp.ne.s32.totalorder %s1965_s1, %s1474_s9  ;;  %p1481_p5 = scmp.lt.u32.totalorder %s1474_s9, %s1965_s1 }
  0x11   : > { %p1725_p11 = pnand %p1363_p9, %p1970_p1 }
  0x13   : > { %p1476_p13 = pneg %p1725_p11 }
  0x15   : > { %p1477_p0 = pnand %p1476_p13, %p1475_p12 }
  0x17   : > { %p1478_p3 = pneg %p1477_p0 }
  0x19   : > { %p1483_p7 = pnand %p1481_p5, %p1478_p3 }
  0x1b   : > { %1486 = shalt.err (!%p1483_p7)
}
  0x1c   : > { %s1487_s14 = scalar_lea.vmem %s1718_s28, 3072  ;;  %p1495_p2 = scmp.lt.s32.totalorder %s1718_s28, %s1718_s28 }
  0x1d   : > { %p1488_p9 = scmp.ne.s32.totalorder %s1718_s28, %s1487_s14  ;;  %p1496_p12 = scmp.lt.s32.totalorder %s1487_s14, %s1487_s14 }
  0x1f   : > { %p1490_p10 = pnand %p1488_p9, %p1476_p13  ;;  %p1497_p0 = por %p1496_p12, %p1495_p2 }
  0x21   : > { %p1491_p1 = pneg %p1490_p10 }
  0x23   : > { %p1498_p6 = pnand %p1497_p0, %p1491_p1 }
  0x25   : > { %1501 = shalt.err (!%p1498_p6)
}
  0x26   : > { %s1634_s15 = smov 64   ;;  %s1635_s16 = smov 4  }
  0x27   : > { %1366 = dma.hbm_to_vmem [thread:$0]  (!%p1725_p11), %s1965_s1, 3072, %s1718_s28, [#allocation8], %s1634_s15, %s1634_s15, %s1635_s16  }
  0x28   : > { %s1502_s7 = scalar_lea.hbm %s1967_s3, 3072 }
  0x29   : > { %p1503_p2 = scmp.ne.s32.totalorder %s1967_s3, %s1502_s7  ;;  %p1509_p10 = scmp.lt.u32.totalorder %s1502_s7, %s1967_s3 }
  0x2b   : > { %p1505_p1 = pnand %p1503_p2, %p1476_p13 }
  0x2d   : > { %p1506_p6 = pneg %p1505_p1 }
  0x2f   : > { %p1511_p3 = pnand %p1509_p10, %p1506_p6 }
  0x31   : > { %1514 = shalt.err (!%p1511_p3)
}
  0x32   : > { %s1515_s28 = scalar_lea.vmem %s1729_s6, 3072  ;;  %p1523_p12 = scmp.lt.s32.totalorder %s1729_s6, %s1729_s6 }
  0x33   : > { %p1516_p5 = scmp.ne.s32.totalorder %s1729_s6, %s1515_s28  ;;  %p1524_p0 = scmp.lt.s32.totalorder %s1515_s28, %s1515_s28 }
  0x35   : > { %p1518_p7 = pnand %p1516_p5, %p1476_p13  ;;  %p1525_p2 = por %p1524_p0, %p1523_p12 }
  0x37   : > { %p1519_p9 = pneg %p1518_p7 }
  0x39   : > { %p1526_p1 = pnand %p1525_p2, %p1519_p9 }
  0x3b   : > { %1529 = shalt.err (!%p1526_p1)
}
  0x3c   : > { %1369 = dma.hbm_to_vmem [thread:$0]  (!%p1725_p11), %s1967_s3, 3072, %s1729_s6, [#allocation8], %s1634_s15, %s1634_s15, %s1635_s16  }
  0x3d   : > { %s1784_s14 = sadd.s32 1, %s1630_s21   ;;  %s29_s29 = sadd.s32 1, %s1626_s20 }
  0x3e   : > { %s26_s17 = ssub.s32 %s1630_s21, %s1784_s14  ;;  %p36_p13 = scmp.ne.s32.totalorder %s1626_s20, %s1622_s19 }
  0x3f   : > { %p27_p6 = scmp.eq.s32.totalorder %s26_s17, 0  ;;  %p37_p10 = scmp.eq.s32.totalorder %s1630_s21, 0 }
  0x40   : > { %p1977_p3 = scmp.eq.s32.totalorder %s1695_s22, 1  ;;  %p1380_p7 = scmp.lt.s32.totalorder %s1630_s21, 2 }
  0x41   : > { %s1800_s27 = scalar_select %p27_p6, %s1626_s20, %s29_s29  }
  0x42   : > { %p1794_p5 = por %p1977_p3, %p36_p13  ;;  %p38_p9 = por %p37_p10, %p36_p13 }
  0x43   : > { %s208_s30 = sand.u32 1, %s1626_s20   ;;  %s1172_s6 = sshll.u32 %s1630_s21, 8 }
  0x44   : > { %s1978_s23 = scalar_select %p1794_p5, 1, 0 }
  0x45   : > { %s1109_s7 = sshll.u32 %s208_s30, 4  ;;  %s1807_s8 = scalar_lea.hbm %s1964_s0, %s1172_s6 }
  0x46   : > { %s212_s9 = scalar_lea.vmem [#allocation4], %s1109_s7  ;;  %p1811_p11 = pnand %p1380_p7, %p38_p9 }
  0x47   : > { %s219_s10 = sshll.u32 %s212_s9, 4  ;;  %s1815_s28 = scalar_lea.sflag [#allocation5], %s208_s30  ;;  %s1809_s10 = int_to_ptr.vmem [resolvable:$true] %s219_s10 }
  0x48   : > { %s1530_s12 = scalar_lea.hbm %s1807_s8, 256  ;;  %p1532_p0 = pneg %p1811_p11 }
  0x49   : > { %p1531_p12 = scmp.ne.s32.totalorder %s1807_s8, %s1530_s12  ;;  %s1535_s17 = scalar_lea.hbm %s1964_s0, 512 }
  0x4a   : > { %p1536_p13 = scmp.lt.u32.totalorder %s1807_s8, %s1964_s0  ;;  %p1537_p6 = scmp.lt.u32.totalorder %s1535_s17, %s1530_s12 }
  0x4b   : > { %p1533_p2 = pnand %p1532_p0, %p1531_p12  ;;  %p1539_p3 = scmp.lt.u32.totalorder %s1530_s12, %s1807_s8 }
  0x4c   : > { %p1538_p10 = por %p1537_p6, %p1536_p13 }
  0x4d   : > { %p1534_p1 = pneg %p1533_p2 }
  0x4e   : > { %p1540_p7 = por %p1539_p3, %p1538_p10 }
  0x50   : > { %p1541_p9 = pnand %p1540_p7, %p1534_p1 }
  0x52   : > { %1544 = shalt.err (!%p1541_p9)
}
  0x53   : > { %s1545_s30 = scalar_lea.vmem %s1809_s10, 256  ;;  %s1636_s15 = smov [#allocation4]  }
  0x54   : > { %p1546_p12 = scmp.ne.s32.totalorder %s1809_s10, %s1545_s30  ;;  %s1550_s16 = sshll.u32 %s1636_s15, 4  ;;  %s1551_s16 = int_to_ptr.vmem [resolvable:$false] %s1550_s16 }
  0x55   : > { %s1552_s9 = scalar_lea.vmem %s1551_s16, 512  ;;  %p1553_p4 = scmp.lt.s32.totalorder %s1809_s10, %s1551_s16 }
  0x56   : > { %p1548_p2 = pnand %p1546_p12, %p1532_p0  ;;  %p1554_p13 = scmp.lt.s32.totalorder %s1552_s9, %s1545_s30 }
  0x58   : > { %p1549_p5 = pneg %p1548_p2  ;;  %p1555_p6 = por %p1554_p13, %p1553_p4 }
  0x5a   : > { %p1556_p10 = pnand %p1555_p6, %p1549_p5 }
  0x5c   : > { %1559 = shalt.err (!%p1556_p10)
}
  0x5d   : > { %s1637_s12 = smov 128   ;;  %s1638_s13 = smov 8  }
  0x5e   : > { %1373 = dma.hbm_to_vmem [thread:$0]  (!%p1811_p11), %s1807_s8, 256, %s1809_s10, %s1815_s28, %s1637_s12, %s1637_s12, %s1638_s13  }
  0x5f   : > { %231 = sbr.rel (%p1714_p8) target bundleno = 671 (0x29f), region = 40  ;;  %s1846_s29 = sand.u32 (!%p1714_p8), 1, %s1622_s19  }
  0x60   : > { %s1113_s17 = sshll.u32 (!%p1714_p8), %s1846_s29, 4  ;;  %s234_s7 = scalar_lea.sflag (!%p1714_p8), [#allocation5], %s1846_s29 }
  0x61   : > { %s1852_s6 = scalar_lea.vmem (!%p1714_p8), [#allocation4], %s1113_s17  ;;  %p1980_p4 = scmp.ne.s32.totalorder (!%p1714_p8), %s1973_s24, 0 }
  0x66   : > { %1605 = dma.done.wait (%p1980_p4), %s234_s7, 256  }
  0x67   : > { %1607 = vsyncadd (%p1980_p4), %s234_s7, 4294967040  ;;  %p1981_p5 = scmp.eq.s32.totalorder %s1695_s22, 0 }
  0x69   : > { %1609 = dma.done.wait (%p1981_p5), [#allocation8], 6144   ;;  %p1982_p8 = pmov %p1981_p5 }
  0x6a   : > { %v1426_v0 = vld [vmem:[#allocation7 + $0x40] sm:$0xff]   ;;  %v1428_v2 = vld [vmem:[#allocation7 + $0x48] sm:$0xff]   ;;  %v1430_v4 = vld [vmem:[#allocation7 + $0x50] sm:$0xff]   ;;  %v1639_v43 = vmov 0.0   ;;  %vm1640_vm0 = vmmov 0   ;;  %s271_s11 = scalar_lea.vmem [#allocation10], %s1113_s17 }
  0x6b   : > { %1611 = vsyncadd (%p1982_p8), [#allocation8], 4294961152  ;;  %v1427_v1 = vld [vmem:[#allocation7] sm:$0xff]   ;;  %1231 = vmatprep.subr.bf16.mxu0 %v1426_v0  ;;  %v1429_v3 = vld [vmem:[#allocation7 + $0x8] sm:$0xff]   ;;  %s1012_s28 = sshll.u32 %s271_s11, 4  ;;  %s1173_s30 = sshll.u32 %s1695_s22, 8  ;;  %s1914_s28 = int_to_ptr.vmem [resolvable:$true] %s1012_s28 }
  0x6c   : > { %1251 = vmatprep.subr.bf16.mxu1 %v1427_v1  ;;  %1232 = vmatpush3.bf16.msra.mxu0 %v1426_v0  ;;  %v1431_v5 = vld [vmem:[#allocation7 + $0x10] sm:$0xff]   ;;  %v1432_v6 = vld [vmem:[#allocation7 + $0x58] sm:$0xff]   ;;  %v1434_v8 = vld [vmem:[#allocation7 + $0x60] sm:$0xff]   ;;  %s1920_s9 = scalar_lea.hbm %s1969_s5, %s1173_s30  ;;  %s999_s12 = scalar_lea.sflag [#allocation6], %s1846_s29 }
  0x6d   : > { %1252 = vmatpush3.bf16.msra.mxu1 %v1427_v1  ;;  %1233 = vmatprep.subr.bf16.mxu0 %v1428_v2  ;;  %v1433_v7 = vld [vmem:[#allocation7 + $0x18] sm:$0xff]   ;;  %v1435_v9 = vld [vmem:[#allocation7 + $0x20] sm:$0xff]   ;;  %v1436_v10 = vld [vmem:[#allocation7 + $0x68] sm:$0xff]   ;;  %s1560_s13 = scalar_lea.vmem %s1914_s28, 256  ;;  %p1983_p0 = scmp.ne.s32.totalorder %s1978_s23, 0 }
  0x6e   : > { %1253 = vmatprep.subr.bf16.mxu1 %v1429_v3  ;;  %v1437_v11 = vld [vmem:[#allocation7 + $0x28] sm:$0xff]   ;;  %v1864_v13 = vld [vmem:[%s1852_s6] sm:$0xff]  ;;  %v1440_v18 = vld [vmem:[#allocation7 + $0x78] sm:$0xff]   ;;  %p1561_p11 = scmp.ne.s32.totalorder %s1914_s28, %s1560_s13  ;;  %s1641_s22 = smov [#allocation10]  }
  0x6f   : > { %v273_v12 = vld [vmem:[%s1852_s6 + $0xe] sm:$0x3]  ;;  %277 = vst [vmem:[#allocation2 + $0x2] sm:$0xff] %v1864_v13  ;;  %v279_v15 = vld [vmem:[%s1852_s6] sm:$0x3]  ;;  %s1564_s17 = sshll.u32 %s1641_s22, 4  ;;  %s1565_s17 = int_to_ptr.vmem [resolvable:$false] %s1564_s17 }
  0x70   : > { %1234 = vmatpush3.bf16.msra.mxu0 %v1428_v2  ;;  %v1867_v14 = vld [vmem:[%s1852_s6 + $0x8] sm:$0xff]  ;;  %274 = vst [vmem:[#allocation2] sm:$0x3] %v273_v12  ;;  %280 = vst [vmem:[#allocation2 + $0x12] sm:$0x3] %v279_v15  ;;  %v1438_v16 = vld [vmem:[#allocation7 + $0x70] sm:$0xff]   ;;  %p1562_p1 = pnand %p1561_p11, %p1983_p0  ;;  %p1567_p7 = scmp.lt.s32.totalorder %s1914_s28, %s1565_s17 }
  0x71   : > { %1254 = vmatpush3.bf16.msra.mxu1 %v1429_v3  ;;  %1235 = vmatprep.subr.bf16.mxu0 %v1430_v4  ;;  %278 = vst [vmem:[#allocation2 + $0xa] sm:$0xff] %v1867_v14  ;;  %v1439_v17 = vld [vmem:[#allocation7 + $0x30] sm:$0xff]   ;;  %v1441_v22 = vld [vmem:[#allocation7 + $0x38] sm:$0xff]   ;;  %v1442_v26 = vld [vmem:[#allocation7 + $0x80] sm:$0xff]   ;;  %v519_v32 = vpack.c.bf16 %v1867_v14, %v1864_v13  ;;  %s1566_s7 = scalar_lea.vmem %s1565_s17, 512 }
  0x72   : > { %1255 = vmatprep.subr.bf16.mxu1 %v1431_v5  ;;  %v1443_v30 = vld [vmem:[#allocation7 + $0x88] sm:$0xff]   ;;  %v1444_v33 = vld [vmem:[#allocation7 + $0x90] sm:$0xff]   ;;  %v1445_v34 = vld [vmem:[#allocation7 + $0x98] sm:$0xff]   ;;  %p1563_p3 = pneg %p1562_p1  ;;  %p1568_p9 = scmp.lt.s32.totalorder %s1566_s7, %s1560_s13 }
  0x73   : > { %v1446_v35 = vld [vmem:[#allocation7 + $0xa0] sm:$0xff]   ;;  %v1447_v36 = vld [vmem:[#allocation7 + $0xa8] sm:$0xff]   ;;  %v1448_v37 = vld [vmem:[#allocation7 + $0xb0] sm:$0xff]  }
  0x74   : > { %1236 = vmatpush3.bf16.msra.mxu0 %v1430_v4  ;;  %v1449_v38 = vld [vmem:[#allocation7 + $0xb8] sm:$0xff]   ;;  %v1450_v41 = vld [vmem:[#allocation9 + $0x40] sm:$0xff]   ;;  %v1452_v44 = vld [vmem:[#allocation9 + $0x48] sm:$0xff]   ;;  %p1569_p12 = por %p1568_p9, %p1567_p7 }
  0x75   : > { %1256 = vmatpush3.bf16.msra.mxu1 %v1431_v5  ;;  %1237 = vmatprep.subr.bf16.mxu0 %v1432_v6  ;;  %v1451_v42 = vld [vmem:[#allocation9] sm:$0xff]   ;;  %v1453_v45 = vld [vmem:[#allocation9 + $0x8] sm:$0xff]   ;;  %v1454_v46 = vld [vmem:[#allocation9 + $0x50] sm:$0xff]  }
  0x76   : > { %1257 = vmatprep.subr.bf16.mxu1 %v1433_v7  ;;  %v1455_v47 = vld [vmem:[#allocation9 + $0x10] sm:$0xff]   ;;  %v1457_v48 = vld [vmem:[#allocation9 + $0x18] sm:$0xff]   ;;  %v1459_v49 = vld [vmem:[#allocation9 + $0x20] sm:$0xff]   ;;  %p1570_p2 = pnand %p1569_p12, %p1563_p3 }
  0x77   : > { %v302_v19 = vld [vmem:[#allocation2 + $0x1] sm:$0xff]  ;;  %v518_v39 = vld [vmem:[#allocation2 + $0x12] sm:$0x3]  ;;  %v1461_v51 = vld [vmem:[#allocation9 + $0x28] sm:$0xff]  }
  0x78   : > { %1238 = vmatpush3.bf16.msra.mxu0 %v1432_v6  ;;  %v303_v20 = vld [vmem:[#allocation2 + $0x9] sm:$0xff]  ;;  %v281_v21 = vld [vmem:[#allocation2] sm:$0xff]  ;;  %v304_v27 = vld [vmem:[#allocation2 + $0x11] sm:$0x3]  ;;  %v520_v40 = vpack.c.bf16 %v518_v39, %v518_v39 }
  0x79   : > { %1258 = vmatpush3.bf16.msra.mxu1 %v1433_v7  ;;  %1239 = vmatprep.subr.bf16.mxu0 %v1434_v8  ;;  %v305_v23 = vpack.c.bf16 %v303_v20, %v302_v19  ;;  %v282_v24 = vld [vmem:[#allocation2 + $0x8] sm:$0xff]  ;;  %v283_v28 = vld [vmem:[#allocation2 + $0x10] sm:$0x3]  ;;  %v306_v29 = vpack.c.bf16 %v304_v27, %v304_v27  ;;  %v1463_v53 = vld [vmem:[#allocation9 + $0x30] sm:$0xff]  }
  0x7a   : > { %1259 = vmatprep.subr.bf16.mxu1 %v1435_v9  ;;  %v284_v25 = vpack.c.bf16 %v282_v24, %v281_v21  ;;  %v285_v31 = vpack.c.bf16 %v283_v28, %v283_v28  ;;  %v1456_v50 = vld [vmem:[#allocation9 + $0x58] sm:$0xff]   ;;  %v1458_v52 = vld [vmem:[#allocation9 + $0x60] sm:$0xff]   ;;  %v1460_v54 = vld [vmem:[#allocation9 + $0x68] sm:$0xff]  }
  0x7b   : > { %1247 = vmatprep.mubr.bf16.mxu0 %v305_v23  ;;  %v1465_v55 = vld [vmem:[#allocation9 + $0x38] sm:$0xff]   ;;  %v1462_v56 = vld [vmem:[#allocation9 + $0x70] sm:$0xff]   ;;  %v1466_v24 = vld [vmem:[#allocation9 + $0x80] sm:$0xff]  }
  0x7c   : > { %1240 = vmatpush3.bf16.msra.mxu0 %v1434_v8  ;;  %1267 = vmatprep.mubr.bf16.mxu1 %v284_v25  ;;  %v1464_v57 = vld [vmem:[#allocation9 + $0x78] sm:$0xff]   ;;  %v1141_v6 = vld [vmem:[%s1966_s2] ss:$0 sm:$0xff] }
  0x7d   : > { %1260 = vmatpush3.bf16.msra.mxu1 %v1435_v9  ;;  %1241 = vmatprep.subr.bf16.mxu0 %v1436_v10  ;;  %v1468_v27 = vld [vmem:[#allocation9 + $0x90] sm:$0xff]   ;;  %v1469_v28 = vld [vmem:[#allocation9 + $0x98] sm:$0xff]  }
  0x7e   : > { %1261 = vmatprep.subr.bf16.mxu1 %v1437_v11 }
  0x80   : > { %1242 = vmatpush3.bf16.msra.mxu0 %v1436_v10 }
  0x81   : > { %1262 = vmatpush3.bf16.msra.mxu1 %v1437_v11  ;;  %1243 = vmatprep.subr.bf16.mxu0 %v1438_v16 }
  0x82   : > { %1263 = vmatprep.subr.bf16.mxu1 %v1439_v17 }
  0x84   : > { %1244 = vmatpush3.bf16.msra.mxu0 %v1438_v16 }
  0x85   : > { %1264 = vmatpush3.bf16.msra.mxu1 %v1439_v17  ;;  %1245 = vmatprep.subr.bf16.mxu0 %v1440_v18 }
  0x86   : > { %1265 = vmatprep.subr.bf16.mxu1 %v1441_v22 }
  0x88   : > { %1246 = vmatpush3.bf16.msra.mxu0 %v1440_v18 }
  0x89   : > { %1266 = vmatpush3.bf16.msra.mxu1 %v1441_v22  ;;  %1271 = vmatprep.subr.bf16.mxu0 %v1442_v26 }
  0x8a   : > { %1291 = vmatprep.subr.bf16.mxu1 %v1639_v43 }
  0x8b   : > { %1248 = vmatmul.mubr.bf16.vlgmr.msra.gmra.mrb[0].mxu0 %v306_v29  ;;  %v1470_v29 = vld [vmem:[#allocation9 + $0xa0] sm:$0xff]  }
  0x8c   : > { %1268 = vmatmul.mubr.bf16.vlgmr.msra.gmra.mrb[0].mxu1 %v285_v31  ;;  %1272 = vmatpush3.bf16.msra.mxu0 %v1442_v26  ;;  %v1467_v26 = vld [vmem:[#allocation9 + $0x88] sm:$0xff]   ;;  %v1472_v31 = vld [vmem:[#allocation9 + $0xb0] sm:$0xff]  }
  0x8d   : > { %1273 = vmatprep.subr.bf16.mxu0 %v1443_v30  ;;  %1287 = vmatprep.mubr.bf16.mxu0 %v519_v32  ;;  %v1473_v32 = vld [vmem:[#allocation9 + $0xb8] sm:$0xff]  }
  0x8e   : > { %1292 = vmatpush3.bf16.msra.mxu1 %v1450_v41  ;;  %1307 = vmatprep.mubr.msk.bf16.mxu1 %vm1640_vm0, %v1639_v43 }
  0x8f   : > { %1293 = vmatprep.subr.bf16.mxu1 %v1639_v43 }
  0x90   : > { %1274 = vmatpush3.bf16.msra.mxu0 %v1443_v30  ;;  %v1471_v30 = vld [vmem:[#allocation9 + $0xa8] sm:$0xff]  }
  0x91   : > { %1275 = vmatprep.subr.bf16.mxu0 %v1444_v33 }
  0x92   : > { %1294 = vmatpush3.bf16.msra.mxu1 %v1452_v44 }
  0x93   : > { %1295 = vmatprep.subr.bf16.mxu1 %v1639_v43 }
  0x94   : > { %1276 = vmatpush3.bf16.msra.mxu0 %v1444_v33 }
  0x95   : > { %1277 = vmatprep.subr.bf16.mxu0 %v1445_v34 }
  0x96   : > { %1296 = vmatpush3.bf16.msra.mxu1 %v1454_v46 }
  0x97   : > { %1297 = vmatprep.subr.bf16.mxu1 %v1639_v43 }
  0x98   : > { %1278 = vmatpush3.bf16.msra.mxu0 %v1445_v34 }
  0x99   : > { %1279 = vmatprep.subr.bf16.mxu0 %v1446_v35 }
  0x9a   : > { %1298 = vmatpush3.bf16.msra.mxu1 %v1456_v50 }
  0x9b   : > { %1299 = vmatprep.subr.bf16.mxu1 %v1639_v43 }
  0x9c   : > { %1280 = vmatpush3.bf16.msra.mxu0 %v1446_v35 }
  0x9d   : > { %1281 = vmatprep.subr.bf16.mxu0 %v1447_v36 }
  0x9e   : > { %1300 = vmatpush3.bf16.msra.mxu1 %v1458_v52 }
  0x9f   : > { %1301 = vmatprep.subr.bf16.mxu1 %v1639_v43 }
  0xa0   : > { %1282 = vmatpush3.bf16.msra.mxu0 %v1447_v36 }
  0xa1   : > { %1283 = vmatprep.subr.bf16.mxu0 %v1448_v37 }
  0xa2   : > { %1302 = vmatpush3.bf16.msra.mxu1 %v1460_v54 }
  0xa3   : > { %1303 = vmatprep.subr.bf16.mxu1 %v1639_v43 }
  0xa4   : > { %1284 = vmatpush3.bf16.msra.mxu0 %v1448_v37 }
  0xa5   : > { %1285 = vmatprep.subr.bf16.mxu0 %v1449_v38 }
  0xa6   : > { %1304 = vmatpush3.bf16.msra.mxu1 %v1462_v56 }
  0xa7   : > { %1305 = vmatprep.subr.bf16.mxu1 %v1639_v43 }
  0xa8   : > { %1286 = vmatpush3.bf16.msra.mxu0 %v1449_v38 }
  0xa9   : > { %1311 = vmatprep.subr.bf16.mxu0 %v1639_v43 }
  0xaa   : > { %1306 = vmatpush3.bf16.msra.mxu1 %v1464_v57 }
  0xab   : > { %1288 = vmatmul.mubr.bf16.vlgmr.msra.gmra.mrb[4].mxu0 %v520_v40  ;;  %1331 = vmatprep.subr.bf16.mxu1 %v1639_v43 }
  0xac   : > { %1312 = vmatpush3.bf16.msra.mxu0 %v1451_v42  ;;  %1327 = vmatprep.mubr.msk.bf16.mxu0 %vm1640_vm0, %v1639_v43 }
  0xad   : > { %1313 = vmatprep.subr.bf16.mxu0 %v1639_v43 }
  0xb0   : > { %1314 = vmatpush3.bf16.msra.mxu0 %v1453_v45 }
  0xb1   : > { %1315 = vmatprep.subr.bf16.mxu0 %v1639_v43 }
  0xb4   : > { %1316 = vmatpush3.bf16.msra.mxu0 %v1455_v47 }
  0xb5   : > { %1317 = vmatprep.subr.bf16.mxu0 %v1639_v43 }
  0xb8   : > { %1318 = vmatpush3.bf16.msra.mxu0 %v1457_v48 }
  0xb9   : > { %1319 = vmatprep.subr.bf16.mxu0 %v1639_v43 }
  0xbc   : > { %1320 = vmatpush3.bf16.msra.mxu0 %v1459_v49 }
  0xbd   : > { %1321 = vmatprep.subr.bf16.mxu0 %v1639_v43 }
  0xc0   : > { %1322 = vmatpush3.bf16.msra.mxu0 %v1461_v51 }
  0xc1   : > { %1323 = vmatprep.subr.bf16.mxu0 %v1639_v43 }
  0xc4   : > { %1324 = vmatpush3.bf16.msra.mxu0 %v1463_v53 }
  0xc5   : > { %1325 = vmatprep.subr.bf16.mxu0 %v1639_v43 }
  0xc8   : > { %1326 = vmatpush3.bf16.msra.mxu0 %v1465_v55 }
 0x15e   : > { %v1249_v58 = vpop.f32.mrb[0].mxu0 }
 0x15f   : > { %v1269_v59 = vpop.f32.mrb[0].mxu1  ;;  %v406_v60 = vpop.f32.mrb[1].mxu0 }
 0x160   : > { %v511_v61 = vadd.f32 %v1269_v59, %v1249_v58  ;;  %v502_v62 = vpop.f32.mrb[1].mxu1  ;;  %v1250_v63 = vpop.f32.mrb[2].mxu0 }
 0x161   : > { %v503_v0 = vadd.f32 %v502_v62, %v406_v60  ;;  %v1270_v1 = vpop.f32.mrb[2].mxu1  ;;  %v409_v2 = vpop.f32.mrb[3].mxu0 }
 0x162   : > { %v505_v3 = vpop.f32.mrb[3].mxu1 }
 0x163   : > { %v506_v4 = vadd.f32 %v505_v3, %v409_v2 }
 0x17e   : > { %v1289_v5 = vpop.f32.mrb[4].mxu0 }
 0x17f   : > { %v636_v7 = vadd.f32 %v1289_v5, %v511_v61  ;;  %v620_v8 = vpop.f32.mrb[5].mxu0 }
 0x180   : > { %v634_v9 = vadd.f32 %v620_v8, %v503_v0  ;;  %v1290_v10 = vpop.f32.mrb[6].mxu0 }
 0x181   : > { %v646_v11 = vadd.f32 %v1141_v6, %v636_v7  ;;  %v623_v12 = vpop.f32.mrb[7].mxu0 }
 0x182   : > { %v644_v15 = vadd.f32 %v1141_v6, %v634_v9  ;;  %v635_v16 = vadd.f32 %v623_v12, %v506_v4 }
 0x183   : > { %v649_v17 = vmax.f32 %v646_v11, 0.0 }
 0x184   : > { %v647_v18 = vmax.f32 %v644_v15, 0.0  ;;  %v645_v19 = vadd.f32 %v1141_v6, %v635_v16 }
 0x185   : > { %652 = vst [vmem:[#allocation3 + $0x10] sm:$0x3] %v649_v17 }
 0x186   : > { %650 = vst [vmem:[#allocation3] sm:$0xff] %v647_v18  ;;  %v648_v20 = vmax.f32 %v645_v19, 0.0 }
 0x188   : > { %651 = vst [vmem:[#allocation3 + $0x8] sm:$0xff] %v648_v20  ;;  %v655_v21 = vpack.c.bf16 %v648_v20, %v647_v18 }
 0x18a   : > { %1328 = vmatmul.mubr.bf16.vlgmr.msra.gmra.mrb[8].mxu0 %v655_v21 }
 0x18f   : > { %v672_v22 = vld [vmem:[#allocation3 + $0x1] sm:$0xff]  ;;  %v673_v23 = vld [vmem:[#allocation3 + $0x9] sm:$0xff] }
 0x190   : > { %v674_v25 = vpack.c.bf16 %v673_v23, %v672_v22  ;;  %v870_v33 = vld [vmem:[#allocation3 + $0x2] sm:$0xff]  ;;  %v871_v34 = vld [vmem:[#allocation3 + $0xa] sm:$0xff] }
 0x191   : > { %v872_v35 = vpack.c.bf16 %v871_v34, %v870_v33 }
 0x192   : > { %1308 = vmatmul.mubr.bf16.vlgmr.msra.gmra.mrb[4].mxu1 %v674_v25 }
 0x193   : > { %1332 = vmatpush3.bf16.msra.mxu1 %v1466_v24  ;;  %1347 = vmatprep.mubr.msk.bf16.mxu1 %vm1640_vm0, %v1639_v43 }
 0x194   : > { %1333 = vmatprep.subr.bf16.mxu1 %v1639_v43 }
 0x197   : > { %1334 = vmatpush3.bf16.msra.mxu1 %v1467_v26 }
 0x198   : > { %1335 = vmatprep.subr.bf16.mxu1 %v1639_v43 }
 0x19b   : > { %1336 = vmatpush3.bf16.msra.mxu1 %v1468_v27 }
 0x19c   : > { %1337 = vmatprep.subr.bf16.mxu1 %v1639_v43 }
 0x19f   : > { %1338 = vmatpush3.bf16.msra.mxu1 %v1469_v28 }
 0x1a0   : > { %1339 = vmatprep.subr.bf16.mxu1 %v1639_v43 }
 0x1a3   : > { %1340 = vmatpush3.bf16.msra.mxu1 %v1470_v29 }
 0x1a4   : > { %1341 = vmatprep.subr.bf16.mxu1 %v1639_v43 }
 0x1a7   : > { %1342 = vmatpush3.bf16.msra.mxu1 %v1471_v30 }
 0x1a8   : > { %1343 = vmatprep.subr.bf16.mxu1 %v1639_v43 }
 0x1ab   : > { %1344 = vmatpush3.bf16.msra.mxu1 %v1472_v31 }
 0x1ac   : > { %1345 = vmatprep.subr.bf16.mxu1 %v1639_v43  ;;  %v1166_v43 = vld [vmem:[%s1968_s4] ss:$0 sm:$0xff] }
 0x1af   : > { %1346 = vmatpush3.bf16.msra.mxu1 %v1473_v32 }
 0x1b2   : > { %1348 = vmatmul.mubr.bf16.vlgmr.msra.gmra.mrb[8].mxu1 %v872_v35 }
 0x25d   : > { %v863_v36 = vpop.f32.mrb[8].mxu0 }
 0x25e   : > { %v1329_v37 = vpop.f32.mrb[9].mxu0 }
 0x25f   : > { %v866_v38 = vpop.f32.mrb[10].mxu0 }
 0x260   : > { %v1330_v39 = vpop.f32.mrb[11].mxu0 }
 0x265   : > { %v774_v40 = vpop.f32.mrb[4].mxu1 }
 0x266   : > { %v864_v41 = vadd.f32 %v863_v36, %v774_v40  ;;  %v1309_v42 = vpop.f32.mrb[5].mxu1 }
 0x267   : > { %v777_v44 = vpop.f32.mrb[6].mxu1 }
 0x268   : > { %v867_v45 = vadd.f32 %v866_v38, %v777_v44  ;;  %v1310_v46 = vpop.f32.mrb[7].mxu1 }
 0x285   : > { %v972_v47 = vpop.f32.mrb[8].mxu1 }
 0x286   : > { %v979_v48 = vadd.f32 %v972_v47, %v864_v41  ;;  %v1349_v49 = vpop.f32.mrb[9].mxu1 }
 0x287   : > { %v975_v50 = vpop.f32.mrb[10].mxu1 }
 0x288   : > { %v988_v51 = vadd.f32 %v1166_v43, %v979_v48  ;;  %v980_v52 = vadd.f32 %v975_v50, %v867_v45  ;;  %v1350_v53 = vpop.f32.mrb[11].mxu1 }
 0x28a   : > { %v992_v54 = vadd.f32 %v988_v51, %v1864_v13  ;;  %v989_v55 = vadd.f32 %v1166_v43, %v980_v52 }
 0x28c   : > { %v994_v56 = vmax.f32 %v992_v54, 0.0  ;;  %v993_v57 = vadd.f32 %v989_v55, %v1867_v14 }
 0x28e   : > { %996 = vst [vmem:[%s271_s11] sm:$0xff] %v994_v56  ;;  %v995_v58 = vmax.f32 %v993_v57, 0.0 }
 0x290   : > { %997 = vst [vmem:[%s271_s11 + $0x8] sm:$0xff] %v995_v58 }
 0x291   : > { %1573 = shalt.err (!%p1570_p2)
}
 0x292   : > { %s1574_s6 = scalar_lea.hbm %s1920_s9, 256  ;;  %s1578_s8 = scalar_lea.hbm %s1969_s5, 512 }
 0x293   : > { %p1575_p13 = scmp.ne.s32.totalorder %s1920_s9, %s1574_s6  ;;  %p1579_p4 = scmp.lt.u32.totalorder %s1920_s9, %s1969_s5 }
 0x294   : > { %p1580_p5 = scmp.lt.u32.totalorder %s1578_s8, %s1574_s6  ;;  %p1582_p11 = scmp.lt.u32.totalorder %s1574_s6, %s1920_s9 }
 0x295   : > { %p1576_p6 = pnand %p1575_p13, %p1983_p0 }
 0x296   : > { %p1581_p8 = por %p1580_p5, %p1579_p4 }
 0x297   : > { %p1577_p10 = pneg %p1576_p6 }
 0x298   : > { %p1583_p1 = por %p1582_p11, %p1581_p8 }
 0x29a   : > { %p1584_p3 = pnand %p1583_p1, %p1577_p10 }
 0x29c   : > { %1587 = shalt.err (!%p1584_p3)
}
 0x29d   : > { %s1642_s30 = smov 128   ;;  %s1643_s15 = smov 8  }
 0x29e   : > { %1361 = dma.vmem_to_hbm [thread:$0]  (%p1983_p0), %s1914_s28, 256, %s1920_s9, %s999_s12, %s1642_s30, %s1642_s30, %s1643_s15  }
 0x29f PF: > { %s1027_s16 = sand.u32 1, %s1618_s18   ;;  %p1984_p7 = scmp.ne.s32.totalorder %s1974_s25, 0 }
 0x2a0   : > { %p1985_p9 = scmp.ge.s32.totalorder %s1630_s21, 2  ;;  %s1028_s13 = scalar_lea.sflag [#allocation6], %s1027_s16 }
 0x2a2   : > { %p1375_p12 = pnand %p1985_p9, %p1984_p7 }
 0x2a4   : > { %1613 = dma.done.wait (!%p1375_p12), %s1028_s13, 256  }
 0x2a5   : > { %1615 = vsyncadd (!%p1375_p12), %s1028_s13, 4294967040  ;;  %p19_p2 = scmp.ge.s32.totalorder %s1784_s14, 4   ;;  %s1986_s18 = smov %s1622_s19 }
 0x2a6   : > { %s1987_s19 = smov %s1626_s20  ;;  %s1988_s20 = smov %s1800_s27 }
 0x2a7   : > { %s1989_s21 = smov %s1784_s14  ;;  %21 = sbr.rel (!%p19_p2) target bundleno = 6 (0x6), region = 97 }
 0x2ae   :  { %1033 = vsyncpa [#allocation5], 1 }
 0x2af   :  { %1035 = vsyncpa [#allocation5 + $0x1], 1 }
 0x2b0   :  { %1036 = vsyncpa [#allocation8], 1 }
 0x2b1   :  { %1037 = vsyncpa [#allocation6], 1 }
 0x2b2   :  { %1039 = vsyncpa [#allocation6 + $0x1], 1 }

// kernel: tpu_custom_call.1
= control target key start
LH: loop header
LB: loop body
LE: loop exit
PB: predicated region body
PF: predicated region fallthrough
CT: control target
= control target key end

     0   :  { %10 = vsyncpa [#allocation5], 0  ;;  %s1964_s0 = inlined_call_operand.hbm [shape: f32[2,16,128], index: 0, kind: input, shape index: {}]   ;;  %s1965_s1 = inlined_call_operand.hbm [shape: bf16[3,128,128], index: 1, kind: input, shape index: {}]   ;;  %s1966_s2 = inlined_call_operand.vmem [shape: f32[1,128], index: 2, kind: input, shape index: {}]   ;;  %s1967_s3 = inlined_call_operand.hbm [shape: bf16[3,128,128], index: 3, kind: input, shape index: {}]   ;;  %s1968_s4 = inlined_call_operand.vmem [shape: f32[1,128], index: 4, kind: input, shape index: {}]   ;;  %s1969_s5 = inlined_call_operand.hbm [shape: f32[2,16,128], index: 5, kind: output, shape index: {}]  }
   0x1   :  { %12 = vsyncpa [#allocation5 + $0x1], 0 }
   0x2   :  { %13 = vsyncpa [#allocation8], 0 }
   0x3   :  { %14 = vsyncpa [#allocation6], 0 }
   0x4   :  { %16 = vsyncpa [#allocation6 + $0x1], 0  ;;  %s1674_s18 = smov 0   ;;  %s1676_s19 = smov 0  }
   0x5   :  { %s1678_s20 = smov 0   ;;  %s1680_s21 = smov 0  }
   0x6 LB: > { %s1695_s22 = sadd.s32 4294967295, %s1630_s21   ;;  %s1104_s23 = sadd.s32 4294967294, %s1630_s21   ;;  %s1630_s21 = sphi %s1680_s21, %s1989_s21   ;;  %s1626_s20 = sphi %s1678_s20, %s1988_s20   ;;  %s1622_s19 = sphi %s1676_s19, %s1987_s19   ;;  %s1618_s18 = sphi %s1674_s18, %s1986_s18  }
   0x7   : > { %p42_p0 = scmp.ne.s32.totalorder %s1622_s19, %s1618_s18  ;;  %p1970_p1 = scmp.eq.s32.totalorder %s1695_s22, 0 }
   0x8   : > { %p156_p3 = scmp.eq.s32.totalorder %s1104_s23, 1  ;;  %p1105_p5 = scmp.ge.s32.totalorder %s1630_s21, 1 }
   0x9   : > { %p1704_p4 = por %p1970_p1, %p42_p0  ;;  %p163_p7 = scmp.lt.s32.totalorder %s1630_s21, 3 }
   0xa   : > { %p1709_p6 = por %p156_p3, %p42_p0  ;;  %s1632_s27 = smov [#allocation7]  }
   0xb   : > { %s1973_s24 = scalar_select %p1704_p4, 1, 0 }
   0xc   : > { %s1974_s25 = scalar_select %p1709_p6, 1, 0 }
   0xd   : > { %p1714_p8 = pnand %p1105_p5, %p163_p7  ;;  %s175_s28 = sshll.u32 %s1632_s27, 4  ;;  %s1718_s28 = int_to_ptr.vmem [resolvable:$true] %s175_s28 }
   0xe   : > { %s1633_s30 = smov [#allocation9]   ;;  %s1474_s9 = scalar_lea.hbm %s1965_s1, 3072 }
   0xf   : > { %p1363_p9 = pneg %p1714_p8  ;;  %s191_s6 = sshll.u32 %s1633_s30, 4  ;;  %s1729_s6 = int_to_ptr.vmem [resolvable:$true] %s191_s6 }
  0x10   : > { %p1475_p12 = scmp.ne.s32.totalorder %s1965_s1, %s1474_s9  ;;  %p1481_p5 = scmp.lt.u32.totalorder %s1474_s9, %s1965_s1 }
  0x11   : > { %p1725_p11 = pnand %p1363_p9, %p1970_p1 }
  0x13   : > { %p1476_p13 = pneg %p1725_p11 }
  0x15   : > { %p1477_p0 = pnand %p1476_p13, %p1475_p12 }
  0x17   : > { %p1478_p3 = pneg %p1477_p0 }
  0x19   : > { %p1483_p7 = pnand %p1481_p5, %p1478_p3 }
  0x1b   : > { %1486 = shalt.err (!%p1483_p7)
}
  0x1c   : > { %s1487_s14 = scalar_lea.vmem %s1718_s28, 3072  ;;  %p1495_p2 = scmp.lt.s32.totalorder %s1718_s28, %s1718_s28 }
  0x1d   : > { %p1488_p9 = scmp.ne.s32.totalorder %s1718_s28, %s1487_s14  ;;  %p1496_p12 = scmp.lt.s32.totalorder %s1487_s14, %s1487_s14 }
  0x1f   : > { %p1490_p10 = pnand %p1488_p9, %p1476_p13  ;;  %p1497_p0 = por %p1496_p12, %p1495_p2 }
  0x21   : > { %p1491_p1 = pneg %p1490_p10 }
  0x23   : > { %p1498_p6 = pnand %p1497_p0, %p1491_p1 }
  0x25   : > { %1501 = shalt.err (!%p1498_p6)
}
  0x26   : > { %s1634_s15 = smov 64   ;;  %s1635_s16 = smov 4  }
  0x27   : > { %1366 = dma.hbm_to_vmem [thread:$0]  (!%p1725_p11), %s1965_s1, 3072, %s1718_s28, [#allocation8], %s1634_s15, %s1634_s15, %s1635_s16  }
  0x28   : > { %s1502_s7 = scalar_lea.hbm %s1967_s3, 3072 }
  0x29   : > { %p1503_p2 = scmp.ne.s32.totalorder %s1967_s3, %s1502_s7  ;;  %p1509_p10 = scmp.lt.u32.totalorder %s1502_s7, %s1967_s3 }
  0x2b   : > { %p1505_p1 = pnand %p1503_p2, %p1476_p13 }
  0x2d   : > { %p1506_p6 = pneg %p1505_p1 }
  0x2f   : > { %p1511_p3 = pnand %p1509_p10, %p1506_p6 }
  0x31   : > { %1514 = shalt.err (!%p1511_p3)
}
  0x32   : > { %s1515_s28 = scalar_lea.vmem %s1729_s6, 3072  ;;  %p1523_p12 = scmp.lt.s32.totalorder %s1729_s6, %s1729_s6 }
  0x33   : > { %p1516_p5 = scmp.ne.s32.totalorder %s1729_s6, %s1515_s28  ;;  %p1524_p0 = scmp.lt.s32.totalorder %s1515_s28, %s1515_s28 }
  0x35   : > { %p1518_p7 = pnand %p1516_p5, %p1476_p13  ;;  %p1525_p2 = por %p1524_p0, %p1523_p12 }
  0x37   : > { %p1519_p9 = pneg %p1518_p7 }
  0x39   : > { %p1526_p1 = pnand %p1525_p2, %p1519_p9 }
  0x3b   : > { %1529 = shalt.err (!%p1526_p1)
}
  0x3c   : > { %1369 = dma.hbm_to_vmem [thread:$0]  (!%p1725_p11), %s1967_s3, 3072, %s1729_s6, [#allocation8], %s1634_s15, %s1634_s15, %s1635_s16  }
  0x3d   : > { %s1784_s14 = sadd.s32 1, %s1630_s21   ;;  %s29_s29 = sadd.s32 1, %s1626_s20 }
  0x3e   : > { %s26_s17 = ssub.s32 %s1630_s21, %s1784_s14  ;;  %p36_p13 = scmp.ne.s32.totalorder %s1626_s20, %s1622_s19 }
  0x3f   : > { %p27_p6 = scmp.eq.s32.totalorder %s26_s17, 0  ;;  %p37_p10 = scmp.eq.s32.totalorder %s1630_s21, 0 }
  0x40   : > { %p1977_p3 = scmp.eq.s32.totalorder %s1695_s22, 1  ;;  %p1380_p7 = scmp.lt.s32.totalorder %s1630_s21, 2 }
  0x41   : > { %s1800_s27 = scalar_select %p27_p6, %s1626_s20, %s29_s29  }
  0x42   : > { %p1794_p5 = por %p1977_p3, %p36_p13  ;;  %p38_p9 = por %p37_p10, %p36_p13 }
  0x43   : > { %s208_s30 = sand.u32 1, %s1626_s20   ;;  %s1172_s6 = sshll.u32 %s1630_s21, 8 }
  0x44   : > { %s1978_s23 = scalar_select %p1794_p5, 1, 0 }
  0x45   : > { %s1109_s7 = sshll.u32 %s208_s30, 4  ;;  %s1807_s8 = scalar_lea.hbm %s1964_s0, %s1172_s6 }
  0x46   : > { %s212_s9 = scalar_lea.vmem [#allocation4], %s1109_s7  ;;  %p1811_p11 = pnand %p1380_p7, %p38_p9 }
  0x47   : > { %s219_s10 = sshll.u32 %s212_s9, 4  ;;  %s1815_s28 = scalar_lea.sflag [#allocation5], %s208_s30  ;;  %s1809_s10 = int_to_ptr.vmem [resolvable:$true] %s219_s10 }
  0x48   : > { %s1530_s12 = scalar_lea.hbm %s1807_s8, 256  ;;  %p1532_p0 = pneg %p1811_p11 }
  0x49   : > { %p1531_p12 = scmp.ne.s32.totalorder %s1807_s8, %s1530_s12  ;;  %s1535_s17 = scalar_lea.hbm %s1964_s0, 512 }
  0x4a   : > { %p1536_p13 = scmp.lt.u32.totalorder %s1807_s8, %s1964_s0  ;;  %p1537_p6 = scmp.lt.u32.totalorder %s1535_s17, %s1530_s12 }
  0x4b   : > { %p1533_p2 = pnand %p1532_p0, %p1531_p12  ;;  %p1539_p3 = scmp.lt.u32.totalorder %s1530_s12, %s1807_s8 }
  0x4c   : > { %p1538_p10 = por %p1537_p6, %p1536_p13 }
  0x4d   : > { %p1534_p1 = pneg %p1533_p2 }
  0x4e   : > { %p1540_p7 = por %p1539_p3, %p1538_p10 }
  0x50   : > { %p1541_p9 = pnand %p1540_p7, %p1534_p1 }
  0x52   : > { %1544 = shalt.err (!%p1541_p9)
}
  0x53   : > { %s1545_s30 = scalar_lea.vmem %s1809_s10, 256  ;;  %s1636_s15 = smov [#allocation4]  }
  0x54   : > { %p1546_p12 = scmp.ne.s32.totalorder %s1809_s10, %s1545_s30  ;;  %s1550_s16 = sshll.u32 %s1636_s15, 4  ;;  %s1551_s16 = int_to_ptr.vmem [resolvable:$false] %s1550_s16 }
  0x55   : > { %s1552_s9 = scalar_lea.vmem %s1551_s16, 512  ;;  %p1553_p4 = scmp.lt.s32.totalorder %s1809_s10, %s1551_s16 }
  0x56   : > { %p1548_p2 = pnand %p1546_p12, %p1532_p0  ;;  %p1554_p13 = scmp.lt.s32.totalorder %s1552_s9, %s1545_s30 }
  0x58   : > { %p1549_p5 = pneg %p1548_p2  ;;  %p1555_p6 = por %p1554_p13, %p1553_p4 }
  0x5a   : > { %p1556_p10 = pnand %p1555_p6, %p1549_p5 }
  0x5c   : > { %1559 = shalt.err (!%p1556_p10)
}
  0x5d   : > { %s1637_s12 = smov 128   ;;  %s1638_s13 = smov 8  }
  0x5e   : > { %1373 = dma.hbm_to_vmem [thread:$0]  (!%p1811_p11), %s1807_s8, 256, %s1809_s10, %s1815_s28, %s1637_s12, %s1637_s12, %s1638_s13  }
  0x5f   : > { %231 = sbr.rel (%p1714_p8) target bundleno = 671 (0x29f), region = 40  ;;  %s1846_s29 = sand.u32 (!%p1714_p8), 1, %s1622_s19  }
  0x60   : > { %s1113_s17 = sshll.u32 (!%p1714_p8), %s1846_s29, 4  ;;  %s234_s7 = scalar_lea.sflag (!%p1714_p8), [#allocation5], %s1846_s29 }
  0x61   : > { %s1852_s6 = scalar_lea.vmem (!%p1714_p8), [#allocation4], %s1113_s17  ;;  %p1980_p4 = scmp.ne.s32.totalorder (!%p1714_p8), %s1973_s24, 0 }
  0x66   : > { %1605 = dma.done.wait (%p1980_p4), %s234_s7, 256  }
  0x67   : > { %1607 = vsyncadd (%p1980_p4), %s234_s7, 4294967040  ;;  %p1981_p5 = scmp.eq.s32.totalorder %s1695_s22, 0 }
  0x69   : > { %1609 = dma.done.wait (%p1981_p5), [#allocation8], 6144   ;;  %p1982_p8 = pmov %p1981_p5 }
  0x6a   : > { %v1426_v0 = vld [vmem:[#allocation7 + $0x40] sm:$0xff]   ;;  %v1428_v2 = vld [vmem:[#allocation7 + $0x48] sm:$0xff]   ;;  %v1430_v4 = vld [vmem:[#allocation7 + $0x50] sm:$0xff]   ;;  %v1639_v43 = vmov 0.0   ;;  %vm1640_vm0 = vmmov 0   ;;  %s271_s11 = scalar_lea.vmem [#allocation10], %s1113_s17 }
  0x6b   : > { %1611 = vsyncadd (%p1982_p8), [#allocation8], 4294961152  ;;  %v1427_v1 = vld [vmem:[#allocation7] sm:$0xff]   ;;  %1231 = vmatprep.subr.bf16.mxu0 %v1426_v0  ;;  %v1429_v3 = vld [vmem:[#allocation7 + $0x8] sm:$0xff]   ;;  %s1012_s28 = sshll.u32 %s271_s11, 4  ;;  %s1173_s30 = sshll.u32 %s1695_s22, 8  ;;  %s1914_s28 = int_to_ptr.vmem [resolvable:$true] %s1012_s28 }
  0x6c   : > { %1251 = vmatprep.subr.bf16.mxu1 %v1427_v1  ;;  %1232 = vmatpush3.bf16.msra.mxu0 %v1426_v0  ;;  %v1431_v5 = vld [vmem:[#allocation7 + $0x10] sm:$0xff]   ;;  %v1432_v6 = vld [vmem:[#allocation7 + $0x58] sm:$0xff]   ;;  %v1434_v8 = vld [vmem:[#allocation7 + $0x60] sm:$0xff]   ;;  %s1920_s9 = scalar_lea.hbm %s1969_s5, %s1173_s30  ;;  %s999_s12 = scalar_lea.sflag [#allocation6], %s1846_s29 }
  0x6d   : > { %1252 = vmatpush3.bf16.msra.mxu1 %v1427_v1  ;;  %1233 = vmatprep.subr.bf16.mxu0 %v1428_v2  ;;  %v1433_v7 = vld [vmem:[#allocation7 + $0x18] sm:$0xff]   ;;  %v1435_v9 = vld [vmem:[#allocation7 + $0x20] sm:$0xff]   ;;  %v1436_v10 = vld [vmem:[#allocation7 + $0x68] sm:$0xff]   ;;  %s1560_s13 = scalar_lea.vmem %s1914_s28, 256  ;;  %p1983_p0 = scmp.ne.s32.totalorder %s1978_s23, 0 }
  0x6e   : > { %1253 = vmatprep.subr.bf16.mxu1 %v1429_v3  ;;  %v1437_v11 = vld [vmem:[#allocation7 + $0x28] sm:$0xff]   ;;  %v1864_v13 = vld [vmem:[%s1852_s6] sm:$0xff]  ;;  %v1440_v18 = vld [vmem:[#allocation7 + $0x78] sm:$0xff]   ;;  %p1561_p11 = scmp.ne.s32.totalorder %s1914_s28, %s1560_s13  ;;  %s1641_s22 = smov [#allocation10]  }
  0x6f   : > { %v273_v12 = vld [vmem:[%s1852_s6 + $0xe] sm:$0x3]  ;;  %277 = vst [vmem:[#allocation2 + $0x2] sm:$0xff] %v1864_v13  ;;  %v279_v15 = vld [vmem:[%s1852_s6] sm:$0x3]  ;;  %s1564_s17 = sshll.u32 %s1641_s22, 4  ;;  %s1565_s17 = int_to_ptr.vmem [resolvable:$false] %s1564_s17 }
  0x70   : > { %1234 = vmatpush3.bf16.msra.mxu0 %v1428_v2  ;;  %v1867_v14 = vld [vmem:[%s1852_s6 + $0x8] sm:$0xff]  ;;  %274 = vst [vmem:[#allocation2] sm:$0x3] %v273_v12  ;;  %280 = vst [vmem:[#allocation2 + $0x12] sm:$0x3] %v279_v15  ;;  %v1438_v16 = vld [vmem:[#allocation7 + $0x70] sm:$0xff]   ;;  %p1562_p1 = pnand %p1561_p11, %p1983_p0  ;;  %p1567_p7 = scmp.lt.s32.totalorder %s1914_s28, %s1565_s17 }
  0x71   : > { %1254 = vmatpush3.bf16.msra.mxu1 %v1429_v3  ;;  %1235 = vmatprep.subr.bf16.mxu0 %v1430_v4  ;;  %278 = vst [vmem:[#allocation2 + $0xa] sm:$0xff] %v1867_v14  ;;  %v1439_v17 = vld [vmem:[#allocation7 + $0x30] sm:$0xff]   ;;  %v1441_v22 = vld [vmem:[#allocation7 + $0x38] sm:$0xff]   ;;  %v1442_v26 = vld [vmem:[#allocation7 + $0x80] sm:$0xff]   ;;  %v519_v32 = vpack.c.bf16 %v1867_v14, %v1864_v13  ;;  %s1566_s7 = scalar_lea.vmem %s1565_s17, 512 }
  0x72   : > { %1255 = vmatprep.subr.bf16.mxu1 %v1431_v5  ;;  %v1443_v30 = vld [vmem:[#allocation7 + $0x88] sm:$0xff]   ;;  %v1444_v33 = vld [vmem:[#allocation7 + $0x90] sm:$0xff]   ;;  %v1445_v34 = vld [vmem:[#allocation7 + $0x98] sm:$0xff]   ;;  %p1563_p3 = pneg %p1562_p1  ;;  %p1568_p9 = scmp.lt.s32.totalorder %s1566_s7, %s1560_s13 }
  0x73   : > { %v1446_v35 = vld [vmem:[#allocation7 + $0xa0] sm:$0xff]   ;;  %v1447_v36 = vld [vmem:[#allocation7 + $0xa8] sm:$0xff]   ;;  %v1448_v37 = vld [vmem:[#allocation7 + $0xb0] sm:$0xff]  }
  0x74   : > { %1236 = vmatpush3.bf16.msra.mxu0 %v1430_v4  ;;  %v1449_v38 = vld [vmem:[#allocation7 + $0xb8] sm:$0xff]   ;;  %v1450_v41 = vld [vmem:[#allocation9 + $0x40] sm:$0xff]   ;;  %v1452_v44 = vld [vmem:[#allocation9 + $0x48] sm:$0xff]   ;;  %p1569_p12 = por %p1568_p9, %p1567_p7 }
  0x75   : > { %1256 = vmatpush3.bf16.msra.mxu1 %v1431_v5  ;;  %1237 = vmatprep.subr.bf16.mxu0 %v1432_v6  ;;  %v1451_v42 = vld [vmem:[#allocation9] sm:$0xff]   ;;  %v1453_v45 = vld [vmem:[#allocation9 + $0x8] sm:$0xff]   ;;  %v1454_v46 = vld [vmem:[#allocation9 + $0x50] sm:$0xff]  }
  0x76   : > { %1257 = vmatprep.subr.bf16.mxu1 %v1433_v7  ;;  %v1455_v47 = vld [vmem:[#allocation9 + $0x10] sm:$0xff]   ;;  %v1457_v48 = vld [vmem:[#allocation9 + $0x18] sm:$0xff]   ;;  %v1459_v49 = vld [vmem:[#allocation9 + $0x20] sm:$0xff]   ;;  %p1570_p2 = pnand %p1569_p12, %p1563_p3 }
  0x77   : > { %v302_v19 = vld [vmem:[#allocation2 + $0x1] sm:$0xff]  ;;  %v518_v39 = vld [vmem:[#allocation2 + $0x12] sm:$0x3]  ;;  %v1461_v51 = vld [vmem:[#allocation9 + $0x28] sm:$0xff]  }
  0x78   : > { %1238 = vmatpush3.bf16.msra.mxu0 %v1432_v6  ;;  %v303_v20 = vld [vmem:[#allocation2 + $0x9] sm:$0xff]  ;;  %v281_v21 = vld [vmem:[#allocation2] sm:$0xff]  ;;  %v304_v27 = vld [vmem:[#allocation2 + $0x11] sm:$0x3]  ;;  %v520_v40 = vpack.c.bf16 %v518_v39, %v518_v39 }
  0x79   : > { %1258 = vmatpush3.bf16.msra.mxu1 %v1433_v7  ;;  %1239 = vmatprep.subr.bf16.mxu0 %v1434_v8  ;;  %v305_v23 = vpack.c.bf16 %v303_v20, %v302_v19  ;;  %v282_v24 = vld [vmem:[#allocation2 + $0x8] sm:$0xff]  ;;  %v283_v28 = vld [vmem:[#allocation2 + $0x10] sm:$0x3]  ;;  %v306_v29 = vpack.c.bf16 %v304_v27, %v304_v27  ;;  %v1463_v53 = vld [vmem:[#allocation9 + $0x30] sm:$0xff]  }
  0x7a   : > { %1259 = vmatprep.subr.bf16.mxu1 %v1435_v9  ;;  %v284_v25 = vpack.c.bf16 %v282_v24, %v281_v21  ;;  %v285_v31 = vpack.c.bf16 %v283_v28, %v283_v28  ;;  %v1456_v50 = vld [vmem:[#allocation9 + $0x58] sm:$0xff]   ;;  %v1458_v52 = vld [vmem:[#allocation9 + $0x60] sm:$0xff]   ;;  %v1460_v54 = vld [vmem:[#allocation9 + $0x68] sm:$0xff]  }
  0x7b   : > { %1247 = vmatprep.mubr.bf16.mxu0 %v305_v23  ;;  %v1465_v55 = vld [vmem:[#allocation9 + $0x38] sm:$0xff]   ;;  %v1462_v56 = vld [vmem:[#allocation9 + $0x70] sm:$0xff]   ;;  %v1466_v24 = vld [vmem:[#allocation9 + $0x80] sm:$0xff]  }
  0x7c   : > { %1240 = vmatpush3.bf16.msra.mxu0 %v1434_v8  ;;  %1267 = vmatprep.mubr.bf16.mxu1 %v284_v25  ;;  %v1464_v57 = vld [vmem:[#allocation9 + $0x78] sm:$0xff]   ;;  %v1141_v6 = vld [vmem:[%s1966_s2] ss:$0 sm:$0xff] }
  0x7d   : > { %1260 = vmatpush3.bf16.msra.mxu1 %v1435_v9  ;;  %1241 = vmatprep.subr.bf16.mxu0 %v1436_v10  ;;  %v1468_v27 = vld [vmem:[#allocation9 + $0x90] sm:$0xff]   ;;  %v1469_v28 = vld [vmem:[#allocation9 + $0x98] sm:$0xff]  }
  0x7e   : > { %1261 = vmatprep.subr.bf16.mxu1 %v1437_v11 }
  0x80   : > { %1242 = vmatpush3.bf16.msra.mxu0 %v1436_v10 }
  0x81   : > { %1262 = vmatpush3.bf16.msra.mxu1 %v1437_v11  ;;  %1243 = vmatprep.subr.bf16.mxu0 %v1438_v16 }
  0x82   : > { %1263 = vmatprep.subr.bf16.mxu1 %v1439_v17 }
  0x84   : > { %1244 = vmatpush3.bf16.msra.mxu0 %v1438_v16 }
  0x85   : > { %1264 = vmatpush3.bf16.msra.mxu1 %v1439_v17  ;;  %1245 = vmatprep.subr.bf16.mxu0 %v1440_v18 }
  0x86   : > { %1265 = vmatprep.subr.bf16.mxu1 %v1441_v22 }
  0x88   : > { %1246 = vmatpush3.bf16.msra.mxu0 %v1440_v18 }
  0x89   : > { %1266 = vmatpush3.bf16.msra.mxu1 %v1441_v22  ;;  %1271 = vmatprep.subr.bf16.mxu0 %v1442_v26 }
  0x8a   : > { %1291 = vmatprep.subr.bf16.mxu1 %v1639_v43 }
  0x8b   : > { %1248 = vmatmul.mubr.bf16.vlgmr.msra.gmra.mrb[0].mxu0 %v306_v29  ;;  %v1470_v29 = vld [vmem:[#allocation9 + $0xa0] sm:$0xff]  }
  0x8c   : > { %1268 = vmatmul.mubr.bf16.vlgmr.msra.gmra.mrb[0].mxu1 %v285_v31  ;;  %1272 = vmatpush3.bf16.msra.mxu0 %v1442_v26  ;;  %v1467_v26 = vld [vmem:[#allocation9 + $0x88] sm:$0xff]   ;;  %v1472_v31 = vld [vmem:[#allocation9 + $0xb0] sm:$0xff]  }
  0x8d   : > { %1273 = vmatprep.subr.bf16.mxu0 %v1443_v30  ;;  %1287 = vmatprep.mubr.bf16.mxu0 %v519_v32  ;;  %v1473_v32 = vld [vmem:[#allocation9 + $0xb8] sm:$0xff]  }
  0x8e   : > { %1292 = vmatpush3.bf16.msra.mxu1 %v1450_v41  ;;  %1307 = vmatprep.mubr.msk.bf16.mxu1 %vm1640_vm0, %v1639_v43 }
  0x8f   : > { %1293 = vmatprep.subr.bf16.mxu1 %v1639_v43 }
  0x90   : > { %1274 = vmatpush3.bf16.msra.mxu0 %v1443_v30  ;;  %v1471_v30 = vld [vmem:[#allocation9 + $0xa8] sm:$0xff]  }
  0x91   : > { %1275 = vmatprep.subr.bf16.mxu0 %v1444_v33 }
  0x92   : > { %1294 = vmatpush3.bf16.msra.mxu1 %v1452_v44 }
  0x93   : > { %1295 = vmatprep.subr.bf16.mxu1 %v1639_v43 }
  0x94   : > { %1276 = vmatpush3.bf16.msra.mxu0 %v1444_v33 }
  0x95   : > { %1277 = vmatprep.subr.bf16.mxu0 %v1445_v34 }
  0x96   : > { %1296 = vmatpush3.bf16.msra.mxu1 %v1454_v46 }
  0x97   : > { %1297 = vmatprep.subr.bf16.mxu1 %v1639_v43 }
  0x98   : > { %1278 = vmatpush3.bf16.msra.mxu0 %v1445_v34 }
  0x99   : > { %1279 = vmatprep.subr.bf16.mxu0 %v1446_v35 }
  0x9a   : > { %1298 = vmatpush3.bf16.msra.mxu1 %v1456_v50 }
  0x9b   : > { %1299 = vmatprep.subr.bf16.mxu1 %v1639_v43 }
  0x9c   : > { %1280 = vmatpush3.bf16.msra.mxu0 %v1446_v35 }
  0x9d   : > { %1281 = vmatprep.subr.bf16.mxu0 %v1447_v36 }
  0x9e   : > { %1300 = vmatpush3.bf16.msra.mxu1 %v1458_v52 }
  0x9f   : > { %1301 = vmatprep.subr.bf16.mxu1 %v1639_v43 }
  0xa0   : > { %1282 = vmatpush3.bf16.msra.mxu0 %v1447_v36 }
  0xa1   : > { %1283 = vmatprep.subr.bf16.mxu0 %v1448_v37 }
  0xa2   : > { %1302 = vmatpush3.bf16.msra.mxu1 %v1460_v54 }
  0xa3   : > { %1303 = vmatprep.subr.bf16.mxu1 %v1639_v43 }
  0xa4   : > { %1284 = vmatpush3.bf16.msra.mxu0 %v1448_v37 }
  0xa5   : > { %1285 = vmatprep.subr.bf16.mxu0 %v1449_v38 }
  0xa6   : > { %1304 = vmatpush3.bf16.msra.mxu1 %v1462_v56 }
  0xa7   : > { %1305 = vmatprep.subr.bf16.mxu1 %v1639_v43 }
  0xa8   : > { %1286 = vmatpush3.bf16.msra.mxu0 %v1449_v38 }
  0xa9   : > { %1311 = vmatprep.subr.bf16.mxu0 %v1639_v43 }
  0xaa   : > { %1306 = vmatpush3.bf16.msra.mxu1 %v1464_v57 }
  0xab   : > { %1288 = vmatmul.mubr.bf16.vlgmr.msra.gmra.mrb[4].mxu0 %v520_v40  ;;  %1331 = vmatprep.subr.bf16.mxu1 %v1639_v43 }
  0xac   : > { %1312 = vmatpush3.bf16.msra.mxu0 %v1451_v42  ;;  %1327 = vmatprep.mubr.msk.bf16.mxu0 %vm1640_vm0, %v1639_v43 }
  0xad   : > { %1313 = vmatprep.subr.bf16.mxu0 %v1639_v43 }
  0xb0   : > { %1314 = vmatpush3.bf16.msra.mxu0 %v1453_v45 }
  0xb1   : > { %1315 = vmatprep.subr.bf16.mxu0 %v1639_v43 }
  0xb4   : > { %1316 = vmatpush3.bf16.msra.mxu0 %v1455_v47 }
  0xb5   : > { %1317 = vmatprep.subr.bf16.mxu0 %v1639_v43 }
  0xb8   : > { %1318 = vmatpush3.bf16.msra.mxu0 %v1457_v48 }
  0xb9   : > { %1319 = vmatprep.subr.bf16.mxu0 %v1639_v43 }
  0xbc   : > { %1320 = vmatpush3.bf16.msra.mxu0 %v1459_v49 }
  0xbd   : > { %1321 = vmatprep.subr.bf16.mxu0 %v1639_v43 }
  0xc0   : > { %1322 = vmatpush3.bf16.msra.mxu0 %v1461_v51 }
  0xc1   : > { %1323 = vmatprep.subr.bf16.mxu0 %v1639_v43 }
  0xc4   : > { %1324 = vmatpush3.bf16.msra.mxu0 %v1463_v53 }
  0xc5   : > { %1325 = vmatprep.subr.bf16.mxu0 %v1639_v43 }
  0xc8   : > { %1326 = vmatpush3.bf16.msra.mxu0 %v1465_v55 }
 0x15e   : > { %v1249_v58 = vpop.f32.mrb[0].mxu0 }
 0x15f   : > { %v1269_v59 = vpop.f32.mrb[0].mxu1  ;;  %v406_v60 = vpop.f32.mrb[1].mxu0 }
 0x160   : > { %v511_v61 = vadd.f32 %v1269_v59, %v1249_v58  ;;  %v502_v62 = vpop.f32.mrb[1].mxu1  ;;  %v1250_v63 = vpop.f32.mrb[2].mxu0 }
 0x161   : > { %v503_v0 = vadd.f32 %v502_v62, %v406_v60  ;;  %v1270_v1 = vpop.f32.mrb[2].mxu1  ;;  %v409_v2 = vpop.f32.mrb[3].mxu0 }
 0x162   : > { %v505_v3 = vpop.f32.mrb[3].mxu1 }
 0x163   : > { %v506_v4 = vadd.f32 %v505_v3, %v409_v2 }
 0x17e   : > { %v1289_v5 = vpop.f32.mrb[4].mxu0 }
 0x17f   : > { %v636_v7 = vadd.f32 %v1289_v5, %v511_v61  ;;  %v620_v8 = vpop.f32.mrb[5].mxu0 }
 0x180   : > { %v634_v9 = vadd.f32 %v620_v8, %v503_v0  ;;  %v1290_v10 = vpop.f32.mrb[6].mxu0 }
 0x181   : > { %v646_v11 = vadd.f32 %v1141_v6, %v636_v7  ;;  %v623_v12 = vpop.f32.mrb[7].mxu0 }
 0x182   : > { %v644_v15 = vadd.f32 %v1141_v6, %v634_v9  ;;  %v635_v16 = vadd.f32 %v623_v12, %v506_v4 }
 0x183   : > { %v649_v17 = vmax.f32 %v646_v11, 0.0 }
 0x184   : > { %v647_v18 = vmax.f32 %v644_v15, 0.0  ;;  %v645_v19 = vadd.f32 %v1141_v6, %v635_v16 }
 0x185   : > { %652 = vst [vmem:[#allocation3 + $0x10] sm:$0x3] %v649_v17 }
 0x186   : > { %650 = vst [vmem:[#allocation3] sm:$0xff] %v647_v18  ;;  %v648_v20 = vmax.f32 %v645_v19, 0.0 }
 0x188   : > { %651 = vst [vmem:[#allocation3 + $0x8] sm:$0xff] %v648_v20  ;;  %v655_v21 = vpack.c.bf16 %v648_v20, %v647_v18 }
 0x18a   : > { %1328 = vmatmul.mubr.bf16.vlgmr.msra.gmra.mrb[8].mxu0 %v655_v21 }
 0x18f   : > { %v672_v22 = vld [vmem:[#allocation3 + $0x1] sm:$0xff]  ;;  %v673_v23 = vld [vmem:[#allocation3 + $0x9] sm:$0xff] }
 0x190   : > { %v674_v25 = vpack.c.bf16 %v673_v23, %v672_v22  ;;  %v870_v33 = vld [vmem:[#allocation3 + $0x2] sm:$0xff]  ;;  %v871_v34 = vld [vmem:[#allocation3 + $0xa] sm:$0xff] }
 0x191   : > { %v872_v35 = vpack.c.bf16 %v871_v34, %v870_v33 }
 0x192   : > { %1308 = vmatmul.mubr.bf16.vlgmr.msra.gmra.mrb[4].mxu1 %v674_v25 }
 0x193   : > { %1332 = vmatpush3.bf16.msra.mxu1 %v1466_v24  ;;  %1347 = vmatprep.mubr.msk.bf16.mxu1 %vm1640_vm0, %v1639_v43 }
 0x194   : > { %1333 = vmatprep.subr.bf16.mxu1 %v1639_v43 }
 0x197   : > { %1334 = vmatpush3.bf16.msra.mxu1 %v1467_v26 }
 0x198   : > { %1335 = vmatprep.subr.bf16.mxu1 %v1639_v43 }
 0x19b   : > { %1336 = vmatpush3.bf16.msra.mxu1 %v1468_v27 }
 0x19c   : > { %1337 = vmatprep.subr.bf16.mxu1 %v1639_v43 }
 0x19f   : > { %1338 = vmatpush3.bf16.msra.mxu1 %v1469_v28 }
 0x1a0   : > { %1339 = vmatprep.subr.bf16.mxu1 %v1639_v43 }
 0x1a3   : > { %1340 = vmatpush3.bf16.msra.mxu1 %v1470_v29 }
 0x1a4   : > { %1341 = vmatprep.subr.bf16.mxu1 %v1639_v43 }
 0x1a7   : > { %1342 = vmatpush3.bf16.msra.mxu1 %v1471_v30 }
 0x1a8   : > { %1343 = vmatprep.subr.bf16.mxu1 %v1639_v43 }
 0x1ab   : > { %1344 = vmatpush3.bf16.msra.mxu1 %v1472_v31 }
 0x1ac   : > { %1345 = vmatprep.subr.bf16.mxu1 %v1639_v43  ;;  %v1166_v43 = vld [vmem:[%s1968_s4] ss:$0 sm:$0xff] }
 0x1af   : > { %1346 = vmatpush3.bf16.msra.mxu1 %v1473_v32 }
 0x1b2   : > { %1348 = vmatmul.mubr.bf16.vlgmr.msra.gmra.mrb[8].mxu1 %v872_v35 }
 0x25d   : > { %v863_v36 = vpop.f32.mrb[8].mxu0 }
 0x25e   : > { %v1329_v37 = vpop.f32.mrb[9].mxu0 }
 0x25f   : > { %v866_v38 = vpop.f32.mrb[10].mxu0 }
 0x260   : > { %v1330_v39 = vpop.f32.mrb[11].mxu0 }
 0x265   : > { %v774_v40 = vpop.f32.mrb[4].mxu1 }
 0x266   : > { %v864_v41 = vadd.f32 %v863_v36, %v774_v40  ;;  %v1309_v42 = vpop.f32.mrb[5].mxu1 }
 0x267   : > { %v777_v44 = vpop.f32.mrb[6].mxu1 }
 0x268   : > { %v867_v45 = vadd.f32 %v866_v38, %v777_v44  ;;  %v1310_v46 = vpop.f32.mrb[7].mxu1 }
 0x285   : > { %v972_v47 = vpop.f32.mrb[8].mxu1 }
 0x286   : > { %v979_v48 = vadd.f32 %v972_v47, %v864_v41  ;;  %v1349_v49 = vpop.f32.mrb[9].mxu1 }
 0x287   : > { %v975_v50 = vpop.f32.mrb[10].mxu1 }
 0x288   : > { %v988_v51 = vadd.f32 %v1166_v43, %v979_v48  ;;  %v980_v52 = vadd.f32 %v975_v50, %v867_v45  ;;  %v1350_v53 = vpop.f32.mrb[11].mxu1 }
 0x28a   : > { %v992_v54 = vadd.f32 %v988_v51, %v1864_v13  ;;  %v989_v55 = vadd.f32 %v1166_v43, %v980_v52 }
 0x28c   : > { %v994_v56 = vmax.f32 %v992_v54, 0.0  ;;  %v993_v57 = vadd.f32 %v989_v55, %v1867_v14 }
 0x28e   : > { %996 = vst [vmem:[%s271_s11] sm:$0xff] %v994_v56  ;;  %v995_v58 = vmax.f32 %v993_v57, 0.0 }
 0x290   : > { %997 = vst [vmem:[%s271_s11 + $0x8] sm:$0xff] %v995_v58 }
 0x291   : > { %1573 = shalt.err (!%p1570_p2)
}
 0x292   : > { %s1574_s6 = scalar_lea.hbm %s1920_s9, 256  ;;  %s1578_s8 = scalar_lea.hbm %s1969_s5, 512 }
 0x293   : > { %p1575_p13 = scmp.ne.s32.totalorder %s1920_s9, %s1574_s6  ;;  %p1579_p4 = scmp.lt.u32.totalorder %s1920_s9, %s1969_s5 }
 0x294   : > { %p1580_p5 = scmp.lt.u32.totalorder %s1578_s8, %s1574_s6  ;;  %p1582_p11 = scmp.lt.u32.totalorder %s1574_s6, %s1920_s9 }
 0x295   : > { %p1576_p6 = pnand %p1575_p13, %p1983_p0 }
 0x296   : > { %p1581_p8 = por %p1580_p5, %p1579_p4 }
 0x297   : > { %p1577_p10 = pneg %p1576_p6 }
 0x298   : > { %p1583_p1 = por %p1582_p11, %p1581_p8 }
 0x29a   : > { %p1584_p3 = pnand %p1583_p1, %p1577_p10 }
 0x29c   : > { %1587 = shalt.err (!%p1584_p3)
}
 0x29d   : > { %s1642_s30 = smov 128   ;;  %s1643_s15 = smov 8  }
 0x29e   : > { %1361 = dma.vmem_to_hbm [thread:$0]  (%p1983_p0), %s1914_s28, 256, %s1920_s9, %s999_s12, %s1642_s30, %s1642_s30, %s1643_s15  }
 0x29f PF: > { %s1027_s16 = sand.u32 1, %s1618_s18   ;;  %p1984_p7 = scmp.ne.s32.totalorder %s1974_s25, 0 }
 0x2a0   : > { %p1985_p9 = scmp.ge.s32.totalorder %s1630_s21, 2  ;;  %s1028_s13 = scalar_lea.sflag [#allocation6], %s1027_s16 }
 0x2a2   : > { %p1375_p12 = pnand %p1985_p9, %p1984_p7 }
 0x2a4   : > { %1613 = dma.done.wait (!%p1375_p12), %s1028_s13, 256  }
 0x2a5   : > { %1615 = vsyncadd (!%p1375_p12), %s1028_s13, 4294967040  ;;  %p19_p2 = scmp.ge.s32.totalorder %s1784_s14, 4   ;;  %s1986_s18 = smov %s1622_s19 }
 0x2a6   : > { %s1987_s19 = smov %s1626_s20  ;;  %s1988_s20 = smov %s1800_s27 }
 0x2a7   : > { %s1989_s21 = smov %s1784_s14  ;;  %21 = sbr.rel (!%p19_p2) target bundleno = 6 (0x6), region = 97 }
 0x2ae   :  { %1033 = vsyncpa [#allocation5], 1 }
 0x2af   :  { %1035 = vsyncpa [#allocation5 + $0x1], 1 }
 0x2b0   :  { %1036 = vsyncpa [#allocation8], 1 }
 0x2b1   :  { %1037 = vsyncpa [#allocation6], 1 }
 0x2b2   :  { %1039 = vsyncpa [#allocation6 + $0x1], 1 }

</bundles_post_ra>
